<compile_context>
chip_gen: v6e
topology: v6e:2x2x1
jax: 0.10.0
libtpu: 0.0.40
codegen_flags: <defaults>
</compile_context>

<pallas_src>
import functools
import math

import jax
import jax.numpy as jnp
from jax.experimental import pallas as pl
from jax.experimental.pallas import tpu as pltpu

BN_EPS = 1e-5
LANE = 128
VMEM_LIMIT = 32 * 1024 * 1024  # conservative: fits v7x's scoped budget too


# ----------------------------------------------------------------------------
# small helpers
# ----------------------------------------------------------------------------
def _round_up(x, m):
    return ((x + m - 1) // m) * m


def _pad_to(x, axis, target):
    if x.shape[axis] == target:
        return x
    pads = [(0, 0)] * x.ndim
    pads[axis] = (0, target - x.shape[axis])
    return jnp.pad(x, pads)


def _pick_tile(dim, max_tile, quantum):
    """Largest tile <= max_tile that divides dim (multiple of `quantum`), else full dim."""
    if dim <= max_tile:
        return dim
    t = (max_tile // quantum) * quantum
    while t >= quantum:
        if dim % t == 0:
            return t
        t -= quantum
    # TODO(synk): pad awkward dims instead of falling back to one full block.
    return dim


def _winit(key, shape, fan_in):
    return jax.random.normal(key, shape, jnp.float32) * (1.0 / math.sqrt(fan_in))


# ----------------------------------------------------------------------------
# Pallas kernel 1: decoder matmul  z = x @ Wm (+ grid @ Wg) + bias_b   (pre-BN)
#   grid = (B, M_tiles, N_tiles, K_tiles), K innermost ("arbitrary"),
#   f32 scratch accumulator, bf16 MXU inputs, per-(tile) BN partial stats output.
# ----------------------------------------------------------------------------
def _dec_mm_kernel(*refs, has_skip, nk):
    if has_skip:
        x_ref, wm_ref, g_ref, wg_ref, b_ref, o_ref, s_ref, acc_ref = refs
    else:
        x_ref, wm_ref, b_ref, o_ref, s_ref, acc_ref = refs
        g_ref = wg_ref = None

    k = pl.program_id(3)

    @pl.when(k == 0)
    def _init():
        init = jnp.broadcast_to(b_ref[0], acc_ref.shape).astype(jnp.float32)
        if has_skip:
            init = init + jnp.dot(g_ref[0], wg_ref[...],
                                  preferred_element_type=jnp.float32)
        acc_ref[...] = init

    acc_ref[...] += jnp.dot(x_ref[0], wm_ref[...],
                            preferred_element_type=jnp.float32)

    @pl.when(k == nk - 1)
    def _finish():
        z = acc_ref[...]
        o_ref[0] = z.astype(o_ref.dtype)
        s_ref[0, 0] = jnp.concatenate(
            [jnp.sum(z, axis=0, keepdims=True),
             jnp.sum(z * z, axis=0, keepdims=True)], axis=0)


def decoder_matmul(x, wm, bias_b, g=None, wg=None, *,
                   tile_m=256, tile_n=256, tile_k=512):
    """x:(B,P,K), wm:(K,N), bias_b:(B,N) per-batch bias, g:(B,P,3), wg:(3,N).
    Returns z:(B,P,N) f32 (pre-BN) and partial stats (B,Mt,2,N)."""
    B, P, K = x.shape
    N = wm.shape[1]
    has_skip = g is not None

    tm = _pick_tile(P, tile_m, 8)
    tn = _pick_tile(N, tile_n, LANE)
    tk = _pick_tile(K, tile_k, LANE)
    mt, nt, kt = P // tm, N // tn, K // tk

    inputs = [x.astype(jnp.bfloat16), wm.astype(jnp.bfloat16)]
    in_specs = [
        pl.BlockSpec((1, tm, tk), lambda b, i, j, k: (b, i, k)),
        pl.BlockSpec((tk, tn), lambda b, i, j, k: (k, j)),
    ]
    if has_skip:
        inputs += [g.astype(jnp.bfloat16), wg.astype(jnp.bfloat16)]
        in_specs += [
            pl.BlockSpec((1, tm, 3), lambda b, i, j, k: (b, i, 0)),
            pl.BlockSpec((3, tn), lambda b, i, j, k: (0, j)),
        ]
    inputs.append(bias_b.reshape(B, 1, N).astype(jnp.float32))
    in_specs.append(pl.BlockSpec((1, 1, tn), lambda b, i, j, k: (b, 0, j)))

    kernel = functools.partial(_dec_mm_kernel, has_skip=has_skip, nk=kt)
    z, stats = pl.pallas_call(
        kernel,
        grid=(B, mt, nt, kt),
        in_specs=in_specs,
        out_specs=(
            pl.BlockSpec((1, tm, tn), lambda b, i, j, k: (b, i, j)),
            pl.BlockSpec((1, 1, 2, tn), lambda b, i, j, k: (b, i, 0, j)),
        ),
        out_shape=(
            jax.ShapeDtypeStruct((B, P, N), jnp.float32),
            jax.ShapeDtypeStruct((B, mt, 2, N), jnp.float32),
        ),
        scratch_shapes=[pltpu.VMEM((tm, tn), jnp.float32)],
        compiler_params=pltpu.CompilerParams(
            dimension_semantics=("parallel", "parallel", "parallel", "arbitrary"),
            vmem_limit_bytes=VMEM_LIMIT),
    )(*inputs)
    return z, stats


# ----------------------------------------------------------------------------
# Pallas kernel 2: BN partial statistics over rows (pass 1 of two-pass BN)
# ----------------------------------------------------------------------------
def _bn_stats_kernel(x_ref, s_ref):
    x = x_ref[...].astype(jnp.float32)
    s_ref[0] = jnp.concatenate(
        [jnp.sum(x, axis=0, keepdims=True),
         jnp.sum(x * x, axis=0, keepdims=True)], axis=0)


def bn_partial_stats(x2d, *, tile_m=512):
    M, C = x2d.shape
    tm = _pick_tile(M, tile_m, 8)
    mt = M // tm
    return pl.pallas_call(
        _bn_stats_kernel,
        grid=(mt,),
        in_specs=[pl.BlockSpec((tm, C), lambda i: (i, 0))],
        out_specs=pl.BlockSpec((1, 2, C), lambda i: (i, 0, 0)),
        out_shape=jax.ShapeDtypeStruct((mt, 2, C), jnp.float32),
        compiler_params=pltpu.CompilerParams(
            dimension_semantics=("parallel",),
            vmem_limit_bytes=VMEM_LIMIT),
    )(x2d)


# ----------------------------------------------------------------------------
# Pallas kernel 3: BN apply (+ residual) (+ activation)   (pass 2 of two-pass BN)
# ----------------------------------------------------------------------------
def _bn_apply_kernel(*refs, has_res, act):
    if has_res:
        x_ref, sc_ref, sh_ref, r_ref, o_ref = refs
    else:
        x_ref, sc_ref, sh_ref, o_ref = refs
        r_ref = None
    y = x_ref[...].astype(jnp.float32) * sc_ref[...] + sh_ref[...]
    if has_res:
        y = y + r_ref[...].astype(jnp.float32)
    if act == "relu":
        y = jnp.maximum(y, 0.0)
    elif act == "tanh":
        y = jnp.tanh(y)
    o_ref[...] = y.astype(o_ref.dtype)


def bn_apply(x2d, scale, shift, residual=None, *, act="none", tile_m=512):
    M, C = x2d.shape
    tm = _pick_tile(M, tile_m, 8)
    mt = M // tm
    has_res = residual is not None

    inputs = [x2d,
              scale.reshape(1, C).astype(jnp.float32),
              shift.reshape(1, C).astype(jnp.float32)]
    in_specs = [pl.BlockSpec((tm, C), lambda i: (i, 0)),
                pl.BlockSpec((1, C), lambda i: (0, 0)),
                pl.BlockSpec((1, C), lambda i: (0, 0))]
    if has_res:
        inputs.append(residual)
        in_specs.append(pl.BlockSpec((tm, C), lambda i: (i, 0)))

    kernel = functools.partial(_bn_apply_kernel, has_res=has_res, act=act)
    return pl.pallas_call(
        kernel,
        grid=(mt,),
        in_specs=in_specs,
        out_specs=pl.BlockSpec((tm, C), lambda i: (i, 0)),
        out_shape=jax.ShapeDtypeStruct((M, C), jnp.float32),
        compiler_params=pltpu.CompilerParams(
            dimension_semantics=("parallel",),
            vmem_limit_bytes=VMEM_LIMIT),
    )(*inputs)


def _bn_scale_shift(stats_total, count, gamma, beta):
    mean = stats_total[0] / count
    var = jnp.maximum(stats_total[1] / count - mean * mean, 0.0)
    inv = jax.lax.rsqrt(var + BN_EPS)
    scale = gamma * inv
    shift = beta - mean * scale
    return scale, shift


# ----------------------------------------------------------------------------
# Encoder: ResNet18 in NHWC. Spatial convs via lax.conv (no im2col in HBM),
# BN + act (+ residual) epilogues via the Pallas two-pass kernels above.
# ----------------------------------------------------------------------------
_BLOCK_CFG = [(64, 64, 1, False), (64, 64, 1, False),
              (64, 128, 2, True), (128, 128, 1, False),
              (128, 256, 2, True), (256, 256, 1, False),
              (256, 512, 2, True), (512, 512, 1, False)]


def conv_nhwc(x, w_hwio, stride, pad):
    # TODO(synk): spatial convolution itself stays on XLA (lax.conv) per perf review;
    # an in-kernel shifted-dot Pallas conv would be the next step.
    return jax.lax.conv_general_dilated(
        x, w_hwio, window_strides=(stride, stride),
        padding=((pad, pad), (pad, pad)),
        dimension_numbers=("NHWC", "HWIO", "NHWC"))


def maxpool_nhwc(x):
    return jax.lax.reduce_window(
        x, -jnp.inf, jax.lax.max,
        window_dimensions=(1, 3, 3, 1),
        window_strides=(1, 2, 2, 1),
        padding=((0, 0), (1, 1), (1, 1), (0, 0)))


def bn_act_nhwc(x, gamma, beta, *, act="relu", residual=None):
    B, H, W, C = x.shape
    M = B * H * W
    xr = x.reshape(M, C)
    total = jnp.sum(bn_partial_stats(xr), axis=0)           # (2, C)
    scale, shift = _bn_scale_shift(total, M, gamma, beta)
    rr = residual.reshape(M, C) if residual is not None else None
    y = bn_apply(xr, scale, shift, rr, act=act)
    return y.reshape(B, H, W, C)


def basic_block(x, bp, stride, downsample):
    identity = x
    out = conv_nhwc(x, bp["conv1_w"], stride, 1)
    out = bn_act_nhwc(out, bp["bn1_g"], bp["bn1_b"], act="relu")
    out = conv_nhwc(out, bp["conv2_w"], 1, 1)
    if downsample:
        ds = conv_nhwc(x, bp["ds_w"], stride, 0)
        identity = bn_act_nhwc(ds, bp["ds_g"], bp["ds_b"], act="none")
    # BN + residual add + ReLU fused into one Pallas pass-2 call.
    return bn_act_nhwc(out, bp["bn2_g"], bp["bn2_b"], act="relu", residual=identity)


def encoder_forward(p, x_nhwc):
    x = conv_nhwc(x_nhwc, p["conv1_w"], 2, 3)
    x = bn_act_nhwc(x, p["bn1_g"], p["bn1_b"], act="relu")
    x = maxpool_nhwc(x)
    for bp, (_, _, stride, ds) in zip(p["blocks"], _BLOCK_CFG):
        x = basic_block(x, bp, stride, ds)
    feat = jnp.mean(x, axis=(1, 2))                          # adaptive avg pool (1,1)
    feat = jnp.dot(feat, p["fc_w"]) + p["fc_b"]              # tiny fc -> XLA (per review)
    return feat                                              # (B, bottleneck)


# ----------------------------------------------------------------------------
# Decoder: PointGenCon_SkipConection as tiled Pallas matmuls with split skip
# weights (no per-layer concat) and the two-pass BN.
# ----------------------------------------------------------------------------
def _decoder_bn_relu(z, stats, gamma, beta, count):
    B, P, N = z.shape
    total = jnp.sum(stats, axis=(0, 1))                      # (2, N)
    scale, shift = _bn_scale_shift(total, count, gamma, beta)
    y = bn_apply(z.reshape(B * P, N), scale, shift, act="relu")
    return y.reshape(B, P, N)


def decoder_forward(p, feat, grid_pts, bottleneck_size):
    B = feat.shape[0]
    Npts = grid_pts.shape[2]
    count = B * Npts
    g = jnp.transpose(grid_pts, (0, 2, 1))                   # (B, P, 3)

    # Layer 1: the feature rows are identical across points -> compute the
    # per-batch feature contribution once (tiny matmul) and broadcast-add it
    # inside the kernel as a per-batch bias; the Pallas matmul contracts only
    # the 3 grid columns.
    base = jnp.dot(feat, p["d1_wf"]) + p["d1_b"]             # (B, N1p)
    z1, s1 = decoder_matmul(g, p["d1_wg"], base)
    x1 = _decoder_bn_relu(z1, s1, p["d1_g"], p["d1_bt"], count)

    # Layer 2: z = x1 @ Wm + grid @ Wg + b   (skip passed as a 2nd input, no concat)
    b2 = jnp.broadcast_to(p["d2_b"][None, :], (B, p["d2_b"].shape[0]))
    z2, s2 = decoder_matmul(x1, p["d2_wm"], b2, g=g, wg=p["d2_wg"])
    x2 = _decoder_bn_relu(z2, s2, p["d2_g"], p["d2_bt"], count)

    # Layer 3
    b3 = jnp.broadcast_to(p["d3_b"][None, :], (B, p["d3_b"].shape[0]))
    z3, s3 = decoder_matmul(x2, p["d3_wm"], b3, g=g, wg=p["d3_wg"])
    x3 = _decoder_bn_relu(z3, s3, p["d3_g"], p["d3_bt"], count)

    # Layer 4: 3-lane-wide output -> plain XLA matmul + tanh (per review).
    x3r = x3[:, :, : bottleneck_size // 4]
    y = (jnp.einsum("bpk,kn->bpn", x3r, p["d4_wm"])
         + jnp.einsum("bpk,kn->bpn", g, p["d4_wg"])
         + p["d4_b"])
    return jnp.tanh(y)                                       # (B, Npts, 3)


def svr_atlasnet_forward(p, x, grid_pts, bottleneck_size):
    x = x[:, :3, :, :]
    x = jnp.transpose(x, (0, 2, 3, 1))                       # NCHW -> NHWC once
    feat = encoder_forward(p, x)
    y = decoder_forward(p, feat, grid_pts, bottleneck_size)
    return y                                                 # == decoder(...).transpose(2,1)


# ----------------------------------------------------------------------------
# Deterministic parameter init (synthetic; shapes follow the PyTorch module).
# Decoder weights are stored pre-split (feature / grid-skip) and zero-padded so
# every matmul lane / contraction dim is a multiple of 128.
# ----------------------------------------------------------------------------
def init_params(key, bottleneck_size):
    keys = iter(jax.random.split(key, 128))
    bs = bottleneck_size
    p = {}

    def conv_w(cout, cin, kh, kw):
        w = _winit(next(keys), (cout, cin, kh, kw), cin * kh * kw)   # OIHW
        return jnp.transpose(w, (2, 3, 1, 0))                        # -> HWIO

    p["conv1_w"] = conv_w(64, 3, 7, 7)
    p["bn1_g"] = jnp.ones((64,), jnp.float32)
    p["bn1_b"] = jnp.zeros((64,), jnp.float32)
    blocks = []
    for cin, cout, stride, ds in _BLOCK_CFG:
        bp = {
            "conv1_w": conv_w(cout, cin, 3, 3),
            "bn1_g": jnp.ones((cout,), jnp.float32),
            "bn1_b": jnp.zeros((cout,), jnp.float32),
            "conv2_w": conv_w(cout, cout, 3, 3),
            "bn2_g": jnp.ones((cout,), jnp.float32),
            "bn2_b": jnp.zeros((cout,), jnp.float32),
        }
        if ds:
            bp["ds_w"] = conv_w(cout, cin, 1, 1)
            bp["ds_g"] = jnp.ones((cout,), jnp.float32)
            bp["ds_b"] = jnp.zeros((cout,), jnp.float32)
        blocks.append(bp)
    p["blocks"] = blocks
    p["fc_w"] = _winit(next(keys), (512, bs), 512)
    p["fc_b"] = _winit(next(keys), (bs,), 512)

    n1, n2, n3 = bs, bs // 2, bs // 4
    n1p, n2p, n3p = _round_up(n1, LANE), _round_up(n2, LANE), _round_up(n3, LANE)

    # layer 1: Conv1d(bs+3 -> bs)
    w1 = _winit(next(keys), (bs + 3, n1), bs + 3)
    p["d1_wf"] = _pad_to(w1[:bs], 1, n1p)                    # (bs, n1p)
    p["d1_wg"] = _pad_to(w1[bs:], 1, n1p)                    # (3, n1p)
    p["d1_b"] = _pad_to(_winit(next(keys), (n1,), bs + 3), 0, n1p)
    p["d1_g"] = jnp.ones((n1p,), jnp.float32)
    p["d1_bt"] = jnp.zeros((n1p,), jnp.float32)
    # layer 2: Conv1d(bs+3 -> bs//2)
    w2 = _winit(next(keys), (n1 + 3, n2), n1 + 3)
    p["d2_wm"] = _pad_to(_pad_to(w2[:n1], 1, n2p), 0, n1p)   # (n1p, n2p)
    p["d2_wg"] = _pad_to(w2[n1:], 1, n2p)
    p["d2_b"] = _pad_to(_winit(next(keys), (n2,), n1 + 3), 0, n2p)
    p["d2_g"] = jnp.ones((n2p,), jnp.float32)
    p["d2_bt"] = jnp.zeros((n2p,), jnp.float32)
    # layer 3: Conv1d(bs//2+3 -> bs//4)
    w3 = _winit(next(keys), (n2 + 3, n3), n2 + 3)
    p["d3_wm"] = _pad_to(_pad_to(w3[:n2], 1, n3p), 0, n2p)   # (n2p, n3p)
    p["d3_wg"] = _pad_to(w3[n2:], 1, n3p)
    p["d3_b"] = _pad_to(_winit(next(keys), (n3,), n2 + 3), 0, n3p)
    p["d3_g"] = jnp.ones((n3p,), jnp.float32)
    p["d3_bt"] = jnp.zeros((n3p,), jnp.float32)
    # layer 4: Conv1d(bs//4+3 -> 3), tiny -> kept unpadded, run in XLA.
    w4 = _winit(next(keys), (n3 + 3, 3), n3 + 3)
    p["d4_wm"] = w4[:n3]
    p["d4_wg"] = w4[n3:]
    p["d4_b"] = _winit(next(keys), (3,), n3 + 3)
    return p


# ----------------------------------------------------------------------------
if __name__ == "__main__":
    bottleneck_size = 64          # small, divisible by 4 (module default is 1024)
    B, Cimg, H, W = 2, 4, 16, 16  # forward slices to the first 3 channels
    Npts = 16                     # number of sphere/grid points

    key = jax.random.PRNGKey(0)
    kp, kx, kg = jax.random.split(key, 3)
    params = init_params(kp, bottleneck_size)
    x = jax.random.normal(kx, (B, Cimg, H, W), jnp.float32)
    grid_pts = jax.random.normal(kg, (B, 3, Npts), jnp.float32)

    fwd = jax.jit(lambda xx, gg: svr_atlasnet_forward(params, xx, gg, bottleneck_size))
    y = fwd(x, grid_pts)
    y = jax.block_until_ready(y)

    assert y.shape == (B, Npts, 3), y.shape
    assert y.dtype == jnp.float32
    assert bool(jnp.all(jnp.isfinite(y)))
    assert bool(jnp.all(jnp.abs(y) <= 1.0 + 1e-6))  # tanh output range
    print("KERNEL_OK")
</pallas_src>

<mosaic_0001>
module attributes {stable_mosaic.version = 11 : i64} {
  func.func @_bn_apply_kernel(%arg0: i32, %arg1: memref<128x64xf32, #tpu.memory_space<vmem>>, %arg2: memref<1x64xf32, #tpu.memory_space<vmem>>, %arg3: memref<1x64xf32, #tpu.memory_space<vmem>>, %arg4: memref<128x64xf32, #tpu.memory_space<vmem>>) attributes {dimension_semantics = [#tpu.dimension_semantics<parallel>], iteration_bounds = array<i64: 1>, scalar_prefetch = 0 : i64, scratch_operands = 0 : i64, tpu.core_type = #tpu.core_type<tc>, window_params = [{transform_indices = @transform_0, window_bounds = array<i64: 128, 64>}, {pipeline_mode = #tpu.pipeline_mode<synchronous>, transform_indices = @transform_1, window_bounds = array<i64: 1, 64>}, {pipeline_mode = #tpu.pipeline_mode<synchronous>, transform_indices = @transform_2, window_bounds = array<i64: 1, 64>}, {transform_indices = @transform_3, window_bounds = array<i64: 128, 64>}]} {
    %c0 = arith.constant 0 : index
    %c0_0 = arith.constant 0 : index
    %0 = vector.load %arg1[%c0, %c0_0] : memref<128x64xf32, #tpu.memory_space<vmem>>, vector<128x64xf32>
    %c0_1 = arith.constant 0 : index
    %c0_2 = arith.constant 0 : index
    %1 = vector.load %arg2[%c0_1, %c0_2] : memref<1x64xf32, #tpu.memory_space<vmem>>, vector<1x64xf32>
    %2 = vector.broadcast %1 : vector<1x64xf32> to vector<128x64xf32>
    %3 = arith.mulf %0, %2 : vector<128x64xf32>
    %c0_3 = arith.constant 0 : index
    %c0_4 = arith.constant 0 : index
    %4 = vector.load %arg3[%c0_3, %c0_4] : memref<1x64xf32, #tpu.memory_space<vmem>>, vector<1x64xf32>
    %5 = vector.broadcast %4 : vector<1x64xf32> to vector<128x64xf32>
    %6 = arith.addf %3, %5 : vector<128x64xf32>
    %cst = arith.constant 0.000000e+00 : f32
    %7 = vector.broadcast %cst : f32 to vector<128x64xf32>
    %8 = arith.maximumf %6, %7 : vector<128x64xf32>
    %c0_5 = arith.constant 0 : index
    %c0_6 = arith.constant 0 : index
    %9 = vector.load %arg4[%c0_5, %c0_6] : memref<128x64xf32, #tpu.memory_space<vmem>>, vector<128x64xf32>
    tpu.vector_store %arg4[%c0_5, %c0_6], %8 {strides = array<i32>} : memref<128x64xf32, #tpu.memory_space<vmem>>, vector<128x64xf32>,
    return
  }
  func.func @transform_0(%arg0: i32) -> (i32, i32) {
    %c0_i32 = arith.constant 0 : i32
    %c0_i32_0 = arith.constant 0 : i32
    return %arg0, %c0_i32 : i32, i32
  }
  func.func @transform_1(%arg0: i32) -> (i32, i32) {
    %c0_i32 = arith.constant 0 : i32
    %c0_i32_0 = arith.constant 0 : i32
    %c0_i32_1 = arith.constant 0 : i32
    return %c0_i32, %c0_i32_0 : i32, i32
  }
  func.func @transform_2(%arg0: i32) -> (i32, i32) {
    %c0_i32 = arith.constant 0 : i32
    %c0_i32_0 = arith.constant 0 : i32
    %c0_i32_1 = arith.constant 0 : i32
    return %c0_i32, %c0_i32_0 : i32, i32
  }
  func.func @transform_3(%arg0: i32) -> (i32, i32) {
    %c0_i32 = arith.constant 0 : i32
    %c0_i32_0 = arith.constant 0 : i32
    return %arg0, %c0_i32 : i32, i32
  }
}

module attributes {stable_mosaic.version = 11 : i64} {
  func.func @_bn_stats_kernel(%arg0: i32, %arg1: memref<128x64xf32, #tpu.memory_space<vmem>>, %arg2: memref<1x2x64xf32, #tpu.memory_space<vmem>>) attributes {dimension_semantics = [#tpu.dimension_semantics<parallel>], iteration_bounds = array<i64: 1>, scalar_prefetch = 0 : i64, scratch_operands = 0 : i64, tpu.core_type = #tpu.core_type<tc>, window_params = [{transform_indices = @transform_0, window_bounds = array<i64: 128, 64>}, {transform_indices = @transform_1, window_bounds = array<i64: 1, 2, 64>}]} {
    %c0 = arith.constant 0 : index
    %c0_0 = arith.constant 0 : index
    %0 = vector.load %arg1[%c0, %c0_0] : memref<128x64xf32, #tpu.memory_space<vmem>>, vector<128x64xf32>
    %cst = arith.constant dense<0.000000e+00> : vector<64xf32>
    %1 = vector.multi_reduction <add>, %0, %cst [0] : vector<128x64xf32> to vector<64xf32>
    %2 = vector.shape_cast %1 : vector<64xf32> to vector<1x64xf32>
    %3 = arith.mulf %0, %0 : vector<128x64xf32>
    %cst_1 = arith.constant dense<0.000000e+00> : vector<64xf32>
    %4 = vector.multi_reduction <add>, %3, %cst_1 [0] : vector<128x64xf32> to vector<64xf32>
    %5 = vector.shape_cast %4 : vector<64xf32> to vector<1x64xf32>
    %6 = tpu.concatenate %2, %5 in 0 : vector<1x64xf32>, vector<1x64xf32> -> vector<2x64xf32>
    %c0_2 = arith.constant 0 : index
    %c0_3 = arith.constant 0 : index
    %c0_4 = arith.constant 0 : index
    %7 = vector.load %arg2[%c0_2, %c0_3, %c0_4] : memref<1x2x64xf32, #tpu.memory_space<vmem>>, vector<1x2x64xf32>
    %8 = vector.shape_cast %7 : vector<1x2x64xf32> to vector<2x64xf32>
    %9 = vector.shape_cast %6 : vector<2x64xf32> to vector<1x2x64xf32>
    tpu.vector_store %arg2[%c0_2, %c0_3, %c0_4], %9 {strides = array<i32>} : memref<1x2x64xf32, #tpu.memory_space<vmem>>, vector<1x2x64xf32>,
    return
  }
  func.func @transform_0(%arg0: i32) -> (i32, i32) {
    %c0_i32 = arith.constant 0 : i32
    %c0_i32_0 = arith.constant 0 : i32
    return %arg0, %c0_i32 : i32, i32
  }
  func.func @transform_1(%arg0: i32) -> (i32, i32, i32) {
    %c0_i32 = arith.constant 0 : i32
    %c0_i32_0 = arith.constant 0 : i32
    %c0_i32_1 = arith.constant 0 : i32
    return %arg0, %c0_i32, %c0_i32_0 : i32, i32, i32
  }
}

module attributes {stable_mosaic.version = 11 : i64} {
  func.func @_bn_apply_kernel(%arg0: i32, %arg1: memref<32x64xf32, #tpu.memory_space<vmem>>, %arg2: memref<1x64xf32, #tpu.memory_space<vmem>>, %arg3: memref<1x64xf32, #tpu.memory_space<vmem>>, %arg4: memref<32x64xf32, #tpu.memory_space<vmem>>) attributes {dimension_semantics = [#tpu.dimension_semantics<parallel>], iteration_bounds = array<i64: 1>, scalar_prefetch = 0 : i64, scratch_operands = 0 : i64, tpu.core_type = #tpu.core_type<tc>, window_params = [{transform_indices = @transform_0, window_bounds = array<i64: 32, 64>}, {pipeline_mode = #tpu.pipeline_mode<synchronous>, transform_indices = @transform_1, window_bounds = array<i64: 1, 64>}, {pipeline_mode = #tpu.pipeline_mode<synchronous>, transform_indices = @transform_2, window_bounds = array<i64: 1, 64>}, {transform_indices = @transform_3, window_bounds = array<i64: 32, 64>}]} {
    %c0 = arith.constant 0 : index
    %c0_0 = arith.constant 0 : index
    %0 = vector.load %arg1[%c0, %c0_0] : memref<32x64xf32, #tpu.memory_space<vmem>>, vector<32x64xf32>
    %c0_1 = arith.constant 0 : index
    %c0_2 = arith.constant 0 : index
    %1 = vector.load %arg2[%c0_1, %c0_2] : memref<1x64xf32, #tpu.memory_space<vmem>>, vector<1x64xf32>
    %2 = vector.broadcast %1 : vector<1x64xf32> to vector<32x64xf32>
    %3 = arith.mulf %0, %2 : vector<32x64xf32>
    %c0_3 = arith.constant 0 : index
    %c0_4 = arith.constant 0 : index
    %4 = vector.load %arg3[%c0_3, %c0_4] : memref<1x64xf32, #tpu.memory_space<vmem>>, vector<1x64xf32>
    %5 = vector.broadcast %4 : vector<1x64xf32> to vector<32x64xf32>
    %6 = arith.addf %3, %5 : vector<32x64xf32>
    %cst = arith.constant 0.000000e+00 : f32
    %7 = vector.broadcast %cst : f32 to vector<32x64xf32>
    %8 = arith.maximumf %6, %7 : vector<32x64xf32>
    %c0_5 = arith.constant 0 : index
    %c0_6 = arith.constant 0 : index
    %9 = vector.load %arg4[%c0_5, %c0_6] : memref<32x64xf32, #tpu.memory_space<vmem>>, vector<32x64xf32>
    tpu.vector_store %arg4[%c0_5, %c0_6], %8 {strides = array<i32>} : memref<32x64xf32, #tpu.memory_space<vmem>>, vector<32x64xf32>,
    return
  }
  func.func @transform_0(%arg0: i32) -> (i32, i32) {
    %c0_i32 = arith.constant 0 : i32
    %c0_i32_0 = arith.constant 0 : i32
    return %arg0, %c0_i32 : i32, i32
  }
  func.func @transform_1(%arg0: i32) -> (i32, i32) {
    %c0_i32 = arith.constant 0 : i32
    %c0_i32_0 = arith.constant 0 : i32
    %c0_i32_1 = arith.constant 0 : i32
    return %c0_i32, %c0_i32_0 : i32, i32
  }
  func.func @transform_2(%arg0: i32) -> (i32, i32) {
    %c0_i32 = arith.constant 0 : i32
    %c0_i32_0 = arith.constant 0 : i32
    %c0_i32_1 = arith.constant 0 : i32
    return %c0_i32, %c0_i32_0 : i32, i32
  }
  func.func @transform_3(%arg0: i32) -> (i32, i32) {
    %c0_i32 = arith.constant 0 : i32
    %c0_i32_0 = arith.constant 0 : i32
    return %arg0, %c0_i32 : i32, i32
  }
}

module attributes {stable_mosaic.version = 11 : i64} {
  func.func @_bn_stats_kernel(%arg0: i32, %arg1: memref<32x64xf32, #tpu.memory_space<vmem>>, %arg2: memref<1x2x64xf32, #tpu.memory_space<vmem>>) attributes {dimension_semantics = [#tpu.dimension_semantics<parallel>], iteration_bounds = array<i64: 1>, scalar_prefetch = 0 : i64, scratch_operands = 0 : i64, tpu.core_type = #tpu.core_type<tc>, window_params = [{transform_indices = @transform_0, window_bounds = array<i64: 32, 64>}, {transform_indices = @transform_1, window_bounds = array<i64: 1, 2, 64>}]} {
    %c0 = arith.constant 0 : index
    %c0_0 = arith.constant 0 : index
    %0 = vector.load %arg1[%c0, %c0_0] : memref<32x64xf32, #tpu.memory_space<vmem>>, vector<32x64xf32>
    %cst = arith.constant dense<0.000000e+00> : vector<64xf32>
    %1 = vector.multi_reduction <add>, %0, %cst [0] : vector<32x64xf32> to vector<64xf32>
    %2 = vector.shape_cast %1 : vector<64xf32> to vector<1x64xf32>
    %3 = arith.mulf %0, %0 : vector<32x64xf32>
    %cst_1 = arith.constant dense<0.000000e+00> : vector<64xf32>
    %4 = vector.multi_reduction <add>, %3, %cst_1 [0] : vector<32x64xf32> to vector<64xf32>
    %5 = vector.shape_cast %4 : vector<64xf32> to vector<1x64xf32>
    %6 = tpu.concatenate %2, %5 in 0 : vector<1x64xf32>, vector<1x64xf32> -> vector<2x64xf32>
    %c0_2 = arith.constant 0 : index
    %c0_3 = arith.constant 0 : index
    %c0_4 = arith.constant 0 : index
    %7 = vector.load %arg2[%c0_2, %c0_3, %c0_4] : memref<1x2x64xf32, #tpu.memory_space<vmem>>, vector<1x2x64xf32>
    %8 = vector.shape_cast %7 : vector<1x2x64xf32> to vector<2x64xf32>
    %9 = vector.shape_cast %6 : vector<2x64xf32> to vector<1x2x64xf32>
    tpu.vector_store %arg2[%c0_2, %c0_3, %c0_4], %9 {strides = array<i32>} : memref<1x2x64xf32, #tpu.memory_space<vmem>>, vector<1x2x64xf32>,
    return
  }
  func.func @transform_0(%arg0: i32) -> (i32, i32) {
    %c0_i32 = arith.constant 0 : i32
    %c0_i32_0 = arith.constant 0 : i32
    return %arg0, %c0_i32 : i32, i32
  }
  func.func @transform_1(%arg0: i32) -> (i32, i32, i32) {
    %c0_i32 = arith.constant 0 : i32
    %c0_i32_0 = arith.constant 0 : i32
    %c0_i32_1 = arith.constant 0 : i32
    return %arg0, %c0_i32, %c0_i32_0 : i32, i32, i32
  }
}

module attributes {stable_mosaic.version = 11 : i64} {
  func.func @_bn_apply_kernel(%arg0: i32, %arg1: memref<32x64xf32, #tpu.memory_space<vmem>>, %arg2: memref<1x64xf32, #tpu.memory_space<vmem>>, %arg3: memref<1x64xf32, #tpu.memory_space<vmem>>, %arg4: memref<32x64xf32, #tpu.memory_space<vmem>>, %arg5: memref<32x64xf32, #tpu.memory_space<vmem>>) attributes {dimension_semantics = [#tpu.dimension_semantics<parallel>], iteration_bounds = array<i64: 1>, scalar_prefetch = 0 : i64, scratch_operands = 0 : i64, tpu.core_type = #tpu.core_type<tc>, window_params = [{transform_indices = @transform_0, window_bounds = array<i64: 32, 64>}, {pipeline_mode = #tpu.pipeline_mode<synchronous>, transform_indices = @transform_1, window_bounds = array<i64: 1, 64>}, {pipeline_mode = #tpu.pipeline_mode<synchronous>, transform_indices = @transform_2, window_bounds = array<i64: 1, 64>}, {transform_indices = @transform_3, window_bounds = array<i64: 32, 64>}, {transform_indices = @transform_4, window_bounds = array<i64: 32, 64>}]} {
    %c0 = arith.constant 0 : index
    %c0_0 = arith.constant 0 : index
    %0 = vector.load %arg1[%c0, %c0_0] : memref<32x64xf32, #tpu.memory_space<vmem>>, vector<32x64xf32>
    %c0_1 = arith.constant 0 : index
    %c0_2 = arith.constant 0 : index
    %1 = vector.load %arg2[%c0_1, %c0_2] : memref<1x64xf32, #tpu.memory_space<vmem>>, vector<1x64xf32>
    %2 = vector.broadcast %1 : vector<1x64xf32> to vector<32x64xf32>
    %3 = arith.mulf %0, %2 : vector<32x64xf32>
    %c0_3 = arith.constant 0 : index
    %c0_4 = arith.constant 0 : index
    %4 = vector.load %arg3[%c0_3, %c0_4] : memref<1x64xf32, #tpu.memory_space<vmem>>, vector<1x64xf32>
    %5 = vector.broadcast %4 : vector<1x64xf32> to vector<32x64xf32>
    %6 = arith.addf %3, %5 : vector<32x64xf32>
    %c0_5 = arith.constant 0 : index
    %c0_6 = arith.constant 0 : index
    %7 = vector.load %arg4[%c0_5, %c0_6] : memref<32x64xf32, #tpu.memory_space<vmem>>, vector<32x64xf32>
    %8 = arith.addf %6, %7 : vector<32x64xf32>
    %cst = arith.constant 0.000000e+00 : f32
    %9 = vector.broadcast %cst : f32 to vector<32x64xf32>
    %10 = arith.maximumf %8, %9 : vector<32x64xf32>
    %c0_7 = arith.constant 0 : index
    %c0_8 = arith.constant 0 : index
    %11 = vector.load %arg5[%c0_7, %c0_8] : memref<32x64xf32, #tpu.memory_space<vmem>>, vector<32x64xf32>
    tpu.vector_store %arg5[%c0_7, %c0_8], %10 {strides = array<i32>} : memref<32x64xf32, #tpu.memory_space<vmem>>, vector<32x64xf32>,
    return
  }
  func.func @transform_0(%arg0: i32) -> (i32, i32) {
    %c0_i32 = arith.constant 0 : i32
    %c0_i32_0 = arith.constant 0 : i32
    return %arg0, %c0_i32 : i32, i32
  }
  func.func @transform_1(%arg0: i32) -> (i32, i32) {
    %c0_i32 = arith.constant 0 : i32
    %c0_i32_0 = arith.constant 0 : i32
    %c0_i32_1 = arith.constant 0 : i32
    return %c0_i32, %c0_i32_0 : i32, i32
  }
  func.func @transform_2(%arg0: i32) -> (i32, i32) {
    %c0_i32 = arith.constant 0 : i32
    %c0_i32_0 = arith.constant 0 : i32
    %c0_i32_1 = arith.constant 0 : i32
    return %c0_i32, %c0_i32_0 : i32, i32
  }
  func.func @transform_3(%arg0: i32) -> (i32, i32) {
    %c0_i32 = arith.constant 0 : i32
    %c0_i32_0 = arith.constant 0 : i32
    return %arg0, %c0_i32 : i32, i32
  }
  func.func @transform_4(%arg0: i32) -> (i32, i32) {
    %c0_i32 = arith.constant 0 : i32
    %c0_i32_0 = arith.constant 0 : i32
    return %arg0, %c0_i32 : i32, i32
  }
}

module attributes {stable_mosaic.version = 11 : i64} {
  func.func @_bn_stats_kernel(%arg0: i32, %arg1: memref<8x128xf32, #tpu.memory_space<vmem>>, %arg2: memref<1x2x128xf32, #tpu.memory_space<vmem>>) attributes {dimension_semantics = [#tpu.dimension_semantics<parallel>], iteration_bounds = array<i64: 1>, scalar_prefetch = 0 : i64, scratch_operands = 0 : i64, tpu.core_type = #tpu.core_type<tc>, window_params = [{transform_indices = @transform_0, window_bounds = array<i64: 8, 128>}, {transform_indices = @transform_1, window_bounds = array<i64: 1, 2, 128>}]} {
    %c0 = arith.constant 0 : index
    %c0_0 = arith.constant 0 : index
    %0 = vector.load %arg1[%c0, %c0_0] : memref<8x128xf32, #tpu.memory_space<vmem>>, vector<8x128xf32>
    %cst = arith.constant dense<0.000000e+00> : vector<128xf32>
    %1 = vector.multi_reduction <add>, %0, %cst [0] : vector<8x128xf32> to vector<128xf32>
    %2 = vector.shape_cast %1 : vector<128xf32> to vector<1x128xf32>
    %3 = arith.mulf %0, %0 : vector<8x128xf32>
    %cst_1 = arith.constant dense<0.000000e+00> : vector<128xf32>
    %4 = vector.multi_reduction <add>, %3, %cst_1 [0] : vector<8x128xf32> to vector<128xf32>
    %5 = vector.shape_cast %4 : vector<128xf32> to vector<1x128xf32>
    %6 = tpu.concatenate %2, %5 in 0 : vector<1x128xf32>, vector<1x128xf32> -> vector<2x128xf32>
    %c0_2 = arith.constant 0 : index
    %c0_3 = arith.constant 0 : index
    %c0_4 = arith.constant 0 : index
    %7 = vector.load %arg2[%c0_2, %c0_3, %c0_4] : memref<1x2x128xf32, #tpu.memory_space<vmem>>, vector<1x2x128xf32>
    %8 = vector.shape_cast %7 : vector<1x2x128xf32> to vector<2x128xf32>
    %9 = vector.shape_cast %6 : vector<2x128xf32> to vector<1x2x128xf32>
    tpu.vector_store %arg2[%c0_2, %c0_3, %c0_4], %9 {strides = array<i32>} : memref<1x2x128xf32, #tpu.memory_space<vmem>>, vector<1x2x128xf32>,
    return
  }
  func.func @transform_0(%arg0: i32) -> (i32, i32) {
    %c0_i32 = arith.constant 0 : i32
    %c0_i32_0 = arith.constant 0 : i32
    return %arg0, %c0_i32 : i32, i32
  }
  func.func @transform_1(%arg0: i32) -> (i32, i32, i32) {
    %c0_i32 = arith.constant 0 : i32
    %c0_i32_0 = arith.constant 0 : i32
    %c0_i32_1 = arith.constant 0 : i32
    return %arg0, %c0_i32, %c0_i32_0 : i32, i32, i32
  }
}

module attributes {stable_mosaic.version = 11 : i64} {
  func.func @_bn_apply_kernel(%arg0: i32, %arg1: memref<8x128xf32, #tpu.memory_space<vmem>>, %arg2: memref<1x128xf32, #tpu.memory_space<vmem>>, %arg3: memref<1x128xf32, #tpu.memory_space<vmem>>, %arg4: memref<8x128xf32, #tpu.memory_space<vmem>>) attributes {dimension_semantics = [#tpu.dimension_semantics<parallel>], iteration_bounds = array<i64: 1>, scalar_prefetch = 0 : i64, scratch_operands = 0 : i64, tpu.core_type = #tpu.core_type<tc>, window_params = [{transform_indices = @transform_0, window_bounds = array<i64: 8, 128>}, {pipeline_mode = #tpu.pipeline_mode<synchronous>, transform_indices = @transform_1, window_bounds = array<i64: 1, 128>}, {pipeline_mode = #tpu.pipeline_mode<synchronous>, transform_indices = @transform_2, window_bounds = array<i64: 1, 128>}, {transform_indices = @transform_3, window_bounds = array<i64: 8, 128>}]} {
    %c0 = arith.constant 0 : index
    %c0_0 = arith.constant 0 : index
    %0 = vector.load %arg1[%c0, %c0_0] : memref<8x128xf32, #tpu.memory_space<vmem>>, vector<8x128xf32>
    %c0_1 = arith.constant 0 : index
    %c0_2 = arith.constant 0 : index
    %1 = vector.load %arg2[%c0_1, %c0_2] : memref<1x128xf32, #tpu.memory_space<vmem>>, vector<1x128xf32>
    %2 = vector.broadcast %1 : vector<1x128xf32> to vector<8x128xf32>
    %3 = arith.mulf %0, %2 : vector<8x128xf32>
    %c0_3 = arith.constant 0 : index
    %c0_4 = arith.constant 0 : index
    %4 = vector.load %arg3[%c0_3, %c0_4] : memref<1x128xf32, #tpu.memory_space<vmem>>, vector<1x128xf32>
    %5 = vector.broadcast %4 : vector<1x128xf32> to vector<8x128xf32>
    %6 = arith.addf %3, %5 : vector<8x128xf32>
    %c0_5 = arith.constant 0 : index
    %c0_6 = arith.constant 0 : index
    %7 = vector.load %arg4[%c0_5, %c0_6] : memref<8x128xf32, #tpu.memory_space<vmem>>, vector<8x128xf32>
    tpu.vector_store %arg4[%c0_5, %c0_6], %6 {strides = array<i32>} : memref<8x128xf32, #tpu.memory_space<vmem>>, vector<8x128xf32>,
    return
  }
  func.func @transform_0(%arg0: i32) -> (i32, i32) {
    %c0_i32 = arith.constant 0 : i32
    %c0_i32_0 = arith.constant 0 : i32
    return %arg0, %c0_i32 : i32, i32
  }
  func.func @transform_1(%arg0: i32) -> (i32, i32) {
    %c0_i32 = arith.constant 0 : i32
    %c0_i32_0 = arith.constant 0 : i32
    %c0_i32_1 = arith.constant 0 : i32
    return %c0_i32, %c0_i32_0 : i32, i32
  }
  func.func @transform_2(%arg0: i32) -> (i32, i32) {
    %c0_i32 = arith.constant 0 : i32
    %c0_i32_0 = arith.constant 0 : i32
    %c0_i32_1 = arith.constant 0 : i32
    return %c0_i32, %c0_i32_0 : i32, i32
  }
  func.func @transform_3(%arg0: i32) -> (i32, i32) {
    %c0_i32 = arith.constant 0 : i32
    %c0_i32_0 = arith.constant 0 : i32
    return %arg0, %c0_i32 : i32, i32
  }
}

module attributes {stable_mosaic.version = 11 : i64} {
  func.func @_bn_apply_kernel(%arg0: i32, %arg1: memref<8x128xf32, #tpu.memory_space<vmem>>, %arg2: memref<1x128xf32, #tpu.memory_space<vmem>>, %arg3: memref<1x128xf32, #tpu.memory_space<vmem>>, %arg4: memref<8x128xf32, #tpu.memory_space<vmem>>, %arg5: memref<8x128xf32, #tpu.memory_space<vmem>>) attributes {dimension_semantics = [#tpu.dimension_semantics<parallel>], iteration_bounds = array<i64: 1>, scalar_prefetch = 0 : i64, scratch_operands = 0 : i64, tpu.core_type = #tpu.core_type<tc>, window_params = [{transform_indices = @transform_0, window_bounds = array<i64: 8, 128>}, {pipeline_mode = #tpu.pipeline_mode<synchronous>, transform_indices = @transform_1, window_bounds = array<i64: 1, 128>}, {pipeline_mode = #tpu.pipeline_mode<synchronous>, transform_indices = @transform_2, window_bounds = array<i64: 1, 128>}, {transform_indices = @transform_3, window_bounds = array<i64: 8, 128>}, {transform_indices = @transform_4, window_bounds = array<i64: 8, 128>}]} {
    %c0 = arith.constant 0 : index
    %c0_0 = arith.constant 0 : index
    %0 = vector.load %arg1[%c0, %c0_0] : memref<8x128xf32, #tpu.memory_space<vmem>>, vector<8x128xf32>
    %c0_1 = arith.constant 0 : index
    %c0_2 = arith.constant 0 : index
    %1 = vector.load %arg2[%c0_1, %c0_2] : memref<1x128xf32, #tpu.memory_space<vmem>>, vector<1x128xf32>
    %2 = vector.broadcast %1 : vector<1x128xf32> to vector<8x128xf32>
    %3 = arith.mulf %0, %2 : vector<8x128xf32>
    %c0_3 = arith.constant 0 : index
    %c0_4 = arith.constant 0 : index
    %4 = vector.load %arg3[%c0_3, %c0_4] : memref<1x128xf32, #tpu.memory_space<vmem>>, vector<1x128xf32>
    %5 = vector.broadcast %4 : vector<1x128xf32> to vector<8x128xf32>
    %6 = arith.addf %3, %5 : vector<8x128xf32>
    %c0_5 = arith.constant 0 : index
    %c0_6 = arith.constant 0 : index
    %7 = vector.load %arg4[%c0_5, %c0_6] : memref<8x128xf32, #tpu.memory_space<vmem>>, vector<8x128xf32>
    %8 = arith.addf %6, %7 : vector<8x128xf32>
    %cst = arith.constant 0.000000e+00 : f32
    %9 = vector.broadcast %cst : f32 to vector<8x128xf32>
    %10 = arith.maximumf %8, %9 : vector<8x128xf32>
    %c0_7 = arith.constant 0 : index
    %c0_8 = arith.constant 0 : index
    %11 = vector.load %arg5[%c0_7, %c0_8] : memref<8x128xf32, #tpu.memory_space<vmem>>, vector<8x128xf32>
    tpu.vector_store %arg5[%c0_7, %c0_8], %10 {strides = array<i32>} : memref<8x128xf32, #tpu.memory_space<vmem>>, vector<8x128xf32>,
    return
  }
  func.func @transform_0(%arg0: i32) -> (i32, i32) {
    %c0_i32 = arith.constant 0 : i32
    %c0_i32_0 = arith.constant 0 : i32
    return %arg0, %c0_i32 : i32, i32
  }
  func.func @transform_1(%arg0: i32) -> (i32, i32) {
    %c0_i32 = arith.constant 0 : i32
    %c0_i32_0 = arith.constant 0 : i32
    %c0_i32_1 = arith.constant 0 : i32
    return %c0_i32, %c0_i32_0 : i32, i32
  }
  func.func @transform_2(%arg0: i32) -> (i32, i32) {
    %c0_i32 = arith.constant 0 : i32
    %c0_i32_0 = arith.constant 0 : i32
    %c0_i32_1 = arith.constant 0 : i32
    return %c0_i32, %c0_i32_0 : i32, i32
  }
  func.func @transform_3(%arg0: i32) -> (i32, i32) {
    %c0_i32 = arith.constant 0 : i32
    %c0_i32_0 = arith.constant 0 : i32
    return %arg0, %c0_i32 : i32, i32
  }
  func.func @transform_4(%arg0: i32) -> (i32, i32) {
    %c0_i32 = arith.constant 0 : i32
    %c0_i32_0 = arith.constant 0 : i32
    return %arg0, %c0_i32 : i32, i32
  }
}

module attributes {stable_mosaic.version = 11 : i64} {
  func.func @_bn_apply_kernel(%arg0: i32, %arg1: memref<8x128xf32, #tpu.memory_space<vmem>>, %arg2: memref<1x128xf32, #tpu.memory_space<vmem>>, %arg3: memref<1x128xf32, #tpu.memory_space<vmem>>, %arg4: memref<8x128xf32, #tpu.memory_space<vmem>>) attributes {dimension_semantics = [#tpu.dimension_semantics<parallel>], iteration_bounds = array<i64: 1>, scalar_prefetch = 0 : i64, scratch_operands = 0 : i64, tpu.core_type = #tpu.core_type<tc>, window_params = [{transform_indices = @transform_0, window_bounds = array<i64: 8, 128>}, {pipeline_mode = #tpu.pipeline_mode<synchronous>, transform_indices = @transform_1, window_bounds = array<i64: 1, 128>}, {pipeline_mode = #tpu.pipeline_mode<synchronous>, transform_indices = @transform_2, window_bounds = array<i64: 1, 128>}, {transform_indices = @transform_3, window_bounds = array<i64: 8, 128>}]} {
    %c0 = arith.constant 0 : index
    %c0_0 = arith.constant 0 : index
    %0 = vector.load %arg1[%c0, %c0_0] : memref<8x128xf32, #tpu.memory_space<vmem>>, vector<8x128xf32>
    %c0_1 = arith.constant 0 : index
    %c0_2 = arith.constant 0 : index
    %1 = vector.load %arg2[%c0_1, %c0_2] : memref<1x128xf32, #tpu.memory_space<vmem>>, vector<1x128xf32>
    %2 = vector.broadcast %1 : vector<1x128xf32> to vector<8x128xf32>
    %3 = arith.mulf %0, %2 : vector<8x128xf32>
    %c0_3 = arith.constant 0 : index
    %c0_4 = arith.constant 0 : index
    %4 = vector.load %arg3[%c0_3, %c0_4] : memref<1x128xf32, #tpu.memory_space<vmem>>, vector<1x128xf32>
    %5 = vector.broadcast %4 : vector<1x128xf32> to vector<8x128xf32>
    %6 = arith.addf %3, %5 : vector<8x128xf32>
    %cst = arith.constant 0.000000e+00 : f32
    %7 = vector.broadcast %cst : f32 to vector<8x128xf32>
    %8 = arith.maximumf %6, %7 : vector<8x128xf32>
    %c0_5 = arith.constant 0 : index
    %c0_6 = arith.constant 0 : index
    %9 = vector.load %arg4[%c0_5, %c0_6] : memref<8x128xf32, #tpu.memory_space<vmem>>, vector<8x128xf32>
    tpu.vector_store %arg4[%c0_5, %c0_6], %8 {strides = array<i32>} : memref<8x128xf32, #tpu.memory_space<vmem>>, vector<8x128xf32>,
    return
  }
  func.func @transform_0(%arg0: i32) -> (i32, i32) {
    %c0_i32 = arith.constant 0 : i32
    %c0_i32_0 = arith.constant 0 : i32
    return %arg0, %c0_i32 : i32, i32
  }
  func.func @transform_1(%arg0: i32) -> (i32, i32) {
    %c0_i32 = arith.constant 0 : i32
    %c0_i32_0 = arith.constant 0 : i32
    %c0_i32_1 = arith.constant 0 : i32
    return %c0_i32, %c0_i32_0 : i32, i32
  }
  func.func @transform_2(%arg0: i32) -> (i32, i32) {
    %c0_i32 = arith.constant 0 : i32
    %c0_i32_0 = arith.constant 0 : i32
    %c0_i32_1 = arith.constant 0 : i32
    return %c0_i32, %c0_i32_0 : i32, i32
  }
  func.func @transform_3(%arg0: i32) -> (i32, i32) {
    %c0_i32 = arith.constant 0 : i32
    %c0_i32_0 = arith.constant 0 : i32
    return %arg0, %c0_i32 : i32, i32
  }
}

module attributes {stable_mosaic.version = 11 : i64} {
  func.func @_bn_stats_kernel(%arg0: i32, %arg1: memref<2x256xf32, #tpu.memory_space<vmem>>, %arg2: memref<1x2x256xf32, #tpu.memory_space<vmem>>) attributes {dimension_semantics = [#tpu.dimension_semantics<parallel>], iteration_bounds = array<i64: 1>, scalar_prefetch = 0 : i64, scratch_operands = 0 : i64, tpu.core_type = #tpu.core_type<tc>, window_params = [{transform_indices = @transform_0, window_bounds = array<i64: 2, 256>}, {transform_indices = @transform_1, window_bounds = array<i64: 1, 2, 256>}]} {
    %c0 = arith.constant 0 : index
    %c0_0 = arith.constant 0 : index
    %0 = vector.load %arg1[%c0, %c0_0] : memref<2x256xf32, #tpu.memory_space<vmem>>, vector<2x256xf32>
    %cst = arith.constant dense<0.000000e+00> : vector<256xf32>
    %1 = vector.multi_reduction <add>, %0, %cst [0] : vector<2x256xf32> to vector<256xf32>
    %2 = vector.shape_cast %1 : vector<256xf32> to vector<1x256xf32>
    %3 = arith.mulf %0, %0 : vector<2x256xf32>
    %cst_1 = arith.constant dense<0.000000e+00> : vector<256xf32>
    %4 = vector.multi_reduction <add>, %3, %cst_1 [0] : vector<2x256xf32> to vector<256xf32>
    %5 = vector.shape_cast %4 : vector<256xf32> to vector<1x256xf32>
    %6 = tpu.concatenate %2, %5 in 0 : vector<1x256xf32>, vector<1x256xf32> -> vector<2x256xf32>
    %c0_2 = arith.constant 0 : index
    %c0_3 = arith.constant 0 : index
    %c0_4 = arith.constant 0 : index
    %7 = vector.load %arg2[%c0_2, %c0_3, %c0_4] : memref<1x2x256xf32, #tpu.memory_space<vmem>>, vector<1x2x256xf32>
    %8 = vector.shape_cast %7 : vector<1x2x256xf32> to vector<2x256xf32>
    %9 = vector.shape_cast %6 : vector<2x256xf32> to vector<1x2x256xf32>
    tpu.vector_store %arg2[%c0_2, %c0_3, %c0_4], %9 {strides = array<i32>} : memref<1x2x256xf32, #tpu.memory_space<vmem>>, vector<1x2x256xf32>,
    return
  }
  func.func @transform_0(%arg0: i32) -> (i32, i32) {
    %c0_i32 = arith.constant 0 : i32
    %c0_i32_0 = arith.constant 0 : i32
    return %arg0, %c0_i32 : i32, i32
  }
  func.func @transform_1(%arg0: i32) -> (i32, i32, i32) {
    %c0_i32 = arith.constant 0 : i32
    %c0_i32_0 = arith.constant 0 : i32
    %c0_i32_1 = arith.constant 0 : i32
    return %arg0, %c0_i32, %c0_i32_0 : i32, i32, i32
  }
}

module attributes {stable_mosaic.version = 11 : i64} {
  func.func @_bn_apply_kernel(%arg0: i32, %arg1: memref<2x256xf32, #tpu.memory_space<vmem>>, %arg2: memref<1x256xf32, #tpu.memory_space<vmem>>, %arg3: memref<1x256xf32, #tpu.memory_space<vmem>>, %arg4: memref<2x256xf32, #tpu.memory_space<vmem>>) attributes {dimension_semantics = [#tpu.dimension_semantics<parallel>], iteration_bounds = array<i64: 1>, scalar_prefetch = 0 : i64, scratch_operands = 0 : i64, tpu.core_type = #tpu.core_type<tc>, window_params = [{transform_indices = @transform_0, window_bounds = array<i64: 2, 256>}, {pipeline_mode = #tpu.pipeline_mode<synchronous>, transform_indices = @transform_1, window_bounds = array<i64: 1, 256>}, {pipeline_mode = #tpu.pipeline_mode<synchronous>, transform_indices = @transform_2, window_bounds = array<i64: 1, 256>}, {transform_indices = @transform_3, window_bounds = array<i64: 2, 256>}]} {
    %c0 = arith.constant 0 : index
    %c0_0 = arith.constant 0 : index
    %0 = vector.load %arg1[%c0, %c0_0] : memref<2x256xf32, #tpu.memory_space<vmem>>, vector<2x256xf32>
    %c0_1 = arith.constant 0 : index
    %c0_2 = arith.constant 0 : index
    %1 = vector.load %arg2[%c0_1, %c0_2] : memref<1x256xf32, #tpu.memory_space<vmem>>, vector<1x256xf32>
    %2 = vector.broadcast %1 : vector<1x256xf32> to vector<2x256xf32>
    %3 = arith.mulf %0, %2 : vector<2x256xf32>
    %c0_3 = arith.constant 0 : index
    %c0_4 = arith.constant 0 : index
    %4 = vector.load %arg3[%c0_3, %c0_4] : memref<1x256xf32, #tpu.memory_space<vmem>>, vector<1x256xf32>
    %5 = vector.broadcast %4 : vector<1x256xf32> to vector<2x256xf32>
    %6 = arith.addf %3, %5 : vector<2x256xf32>
    %cst = arith.constant 0.000000e+00 : f32
    %7 = vector.broadcast %cst : f32 to vector<2x256xf32>
    %8 = arith.maximumf %6, %7 : vector<2x256xf32>
    %c0_5 = arith.constant 0 : index
    %c0_6 = arith.constant 0 : index
    %9 = vector.load %arg4[%c0_5, %c0_6] : memref<2x256xf32, #tpu.memory_space<vmem>>, vector<2x256xf32>
    tpu.vector_store %arg4[%c0_5, %c0_6], %8 {strides = array<i32>} : memref<2x256xf32, #tpu.memory_space<vmem>>, vector<2x256xf32>,
    return
  }
  func.func @transform_0(%arg0: i32) -> (i32, i32) {
    %c0_i32 = arith.constant 0 : i32
    %c0_i32_0 = arith.constant 0 : i32
    return %arg0, %c0_i32 : i32, i32
  }
  func.func @transform_1(%arg0: i32) -> (i32, i32) {
    %c0_i32 = arith.constant 0 : i32
    %c0_i32_0 = arith.constant 0 : i32
    %c0_i32_1 = arith.constant 0 : i32
    return %c0_i32, %c0_i32_0 : i32, i32
  }
  func.func @transform_2(%arg0: i32) -> (i32, i32) {
    %c0_i32 = arith.constant 0 : i32
    %c0_i32_0 = arith.constant 0 : i32
    %c0_i32_1 = arith.constant 0 : i32
    return %c0_i32, %c0_i32_0 : i32, i32
  }
  func.func @transform_3(%arg0: i32) -> (i32, i32) {
    %c0_i32 = arith.constant 0 : i32
    %c0_i32_0 = arith.constant 0 : i32
    return %arg0, %c0_i32 : i32, i32
  }
}

module attributes {stable_mosaic.version = 11 : i64} {
  func.func @_bn_apply_kernel(%arg0: i32, %arg1: memref<2x256xf32, #tpu.memory_space<vmem>>, %arg2: memref<1x256xf32, #tpu.memory_space<vmem>>, %arg3: memref<1x256xf32, #tpu.memory_space<vmem>>, %arg4: memref<2x256xf32, #tpu.memory_space<vmem>>) attributes {dimension_semantics = [#tpu.dimension_semantics<parallel>], iteration_bounds = array<i64: 1>, scalar_prefetch = 0 : i64, scratch_operands = 0 : i64, tpu.core_type = #tpu.core_type<tc>, window_params = [{transform_indices = @transform_0, window_bounds = array<i64: 2, 256>}, {pipeline_mode = #tpu.pipeline_mode<synchronous>, transform_indices = @transform_1, window_bounds = array<i64: 1, 256>}, {pipeline_mode = #tpu.pipeline_mode<synchronous>, transform_indices = @transform_2, window_bounds = array<i64: 1, 256>}, {transform_indices = @transform_3, window_bounds = array<i64: 2, 256>}]} {
    %c0 = arith.constant 0 : index
    %c0_0 = arith.constant 0 : index
    %0 = vector.load %arg1[%c0, %c0_0] : memref<2x256xf32, #tpu.memory_space<vmem>>, vector<2x256xf32>
    %c0_1 = arith.constant 0 : index
    %c0_2 = arith.constant 0 : index
    %1 = vector.load %arg2[%c0_1, %c0_2] : memref<1x256xf32, #tpu.memory_space<vmem>>, vector<1x256xf32>
    %2 = vector.broadcast %1 : vector<1x256xf32> to vector<2x256xf32>
    %3 = arith.mulf %0, %2 : vector<2x256xf32>
    %c0_3 = arith.constant 0 : index
    %c0_4 = arith.constant 0 : index
    %4 = vector.load %arg3[%c0_3, %c0_4] : memref<1x256xf32, #tpu.memory_space<vmem>>, vector<1x256xf32>
    %5 = vector.broadcast %4 : vector<1x256xf32> to vector<2x256xf32>
    %6 = arith.addf %3, %5 : vector<2x256xf32>
    %c0_5 = arith.constant 0 : index
    %c0_6 = arith.constant 0 : index
    %7 = vector.load %arg4[%c0_5, %c0_6] : memref<2x256xf32, #tpu.memory_space<vmem>>, vector<2x256xf32>
    tpu.vector_store %arg4[%c0_5, %c0_6], %6 {strides = array<i32>} : memref<2x256xf32, #tpu.memory_space<vmem>>, vector<2x256xf32>,
    return
  }
  func.func @transform_0(%arg0: i32) -> (i32, i32) {
    %c0_i32 = arith.constant 0 : i32
    %c0_i32_0 = arith.constant 0 : i32
    return %arg0, %c0_i32 : i32, i32
  }
  func.func @transform_1(%arg0: i32) -> (i32, i32) {
    %c0_i32 = arith.constant 0 : i32
    %c0_i32_0 = arith.constant 0 : i32
    %c0_i32_1 = arith.constant 0 : i32
    return %c0_i32, %c0_i32_0 : i32, i32
  }
  func.func @transform_2(%arg0: i32) -> (i32, i32) {
    %c0_i32 = arith.constant 0 : i32
    %c0_i32_0 = arith.constant 0 : i32
    %c0_i32_1 = arith.constant 0 : i32
    return %c0_i32, %c0_i32_0 : i32, i32
  }
  func.func @transform_3(%arg0: i32) -> (i32, i32) {
    %c0_i32 = arith.constant 0 : i32
    %c0_i32_0 = arith.constant 0 : i32
    return %arg0, %c0_i32 : i32, i32
  }
}

module attributes {stable_mosaic.version = 11 : i64} {
  func.func @_bn_apply_kernel(%arg0: i32, %arg1: memref<2x256xf32, #tpu.memory_space<vmem>>, %arg2: memref<1x256xf32, #tpu.memory_space<vmem>>, %arg3: memref<1x256xf32, #tpu.memory_space<vmem>>, %arg4: memref<2x256xf32, #tpu.memory_space<vmem>>, %arg5: memref<2x256xf32, #tpu.memory_space<vmem>>) attributes {dimension_semantics = [#tpu.dimension_semantics<parallel>], iteration_bounds = array<i64: 1>, scalar_prefetch = 0 : i64, scratch_operands = 0 : i64, tpu.core_type = #tpu.core_type<tc>, window_params = [{transform_indices = @transform_0, window_bounds = array<i64: 2, 256>}, {pipeline_mode = #tpu.pipeline_mode<synchronous>, transform_indices = @transform_1, window_bounds = array<i64: 1, 256>}, {pipeline_mode = #tpu.pipeline_mode<synchronous>, transform_indices = @transform_2, window_bounds = array<i64: 1, 256>}, {transform_indices = @transform_3, window_bounds = array<i64: 2, 256>}, {transform_indices = @transform_4, window_bounds = array<i64: 2, 256>}]} {
    %c0 = arith.constant 0 : index
    %c0_0 = arith.constant 0 : index
    %0 = vector.load %arg1[%c0, %c0_0] : memref<2x256xf32, #tpu.memory_space<vmem>>, vector<2x256xf32>
    %c0_1 = arith.constant 0 : index
    %c0_2 = arith.constant 0 : index
    %1 = vector.load %arg2[%c0_1, %c0_2] : memref<1x256xf32, #tpu.memory_space<vmem>>, vector<1x256xf32>
    %2 = vector.broadcast %1 : vector<1x256xf32> to vector<2x256xf32>
    %3 = arith.mulf %0, %2 : vector<2x256xf32>
    %c0_3 = arith.constant 0 : index
    %c0_4 = arith.constant 0 : index
    %4 = vector.load %arg3[%c0_3, %c0_4] : memref<1x256xf32, #tpu.memory_space<vmem>>, vector<1x256xf32>
    %5 = vector.broadcast %4 : vector<1x256xf32> to vector<2x256xf32>
    %6 = arith.addf %3, %5 : vector<2x256xf32>
    %c0_5 = arith.constant 0 : index
    %c0_6 = arith.constant 0 : index
    %7 = vector.load %arg4[%c0_5, %c0_6] : memref<2x256xf32, #tpu.memory_space<vmem>>, vector<2x256xf32>
    %8 = arith.addf %6, %7 : vector<2x256xf32>
    %cst = arith.constant 0.000000e+00 : f32
    %9 = vector.broadcast %cst : f32 to vector<2x256xf32>
    %10 = arith.maximumf %8, %9 : vector<2x256xf32>
    %c0_7 = arith.constant 0 : index
    %c0_8 = arith.constant 0 : index
    %11 = vector.load %arg5[%c0_7, %c0_8] : memref<2x256xf32, #tpu.memory_space<vmem>>, vector<2x256xf32>
    tpu.vector_store %arg5[%c0_7, %c0_8], %10 {strides = array<i32>} : memref<2x256xf32, #tpu.memory_space<vmem>>, vector<2x256xf32>,
    return
  }
  func.func @transform_0(%arg0: i32) -> (i32, i32) {
    %c0_i32 = arith.constant 0 : i32
    %c0_i32_0 = arith.constant 0 : i32
    return %arg0, %c0_i32 : i32, i32
  }
  func.func @transform_1(%arg0: i32) -> (i32, i32) {
    %c0_i32 = arith.constant 0 : i32
    %c0_i32_0 = arith.constant 0 : i32
    %c0_i32_1 = arith.constant 0 : i32
    return %c0_i32, %c0_i32_0 : i32, i32
  }
  func.func @transform_2(%arg0: i32) -> (i32, i32) {
    %c0_i32 = arith.constant 0 : i32
    %c0_i32_0 = arith.constant 0 : i32
    %c0_i32_1 = arith.constant 0 : i32
    return %c0_i32, %c0_i32_0 : i32, i32
  }
  func.func @transform_3(%arg0: i32) -> (i32, i32) {
    %c0_i32 = arith.constant 0 : i32
    %c0_i32_0 = arith.constant 0 : i32
    return %arg0, %c0_i32 : i32, i32
  }
  func.func @transform_4(%arg0: i32) -> (i32, i32) {
    %c0_i32 = arith.constant 0 : i32
    %c0_i32_0 = arith.constant 0 : i32
    return %arg0, %c0_i32 : i32, i32
  }
}

module attributes {stable_mosaic.version = 11 : i64} {
  func.func @_bn_stats_kernel(%arg0: i32, %arg1: memref<2x512xf32, #tpu.memory_space<vmem>>, %arg2: memref<1x2x512xf32, #tpu.memory_space<vmem>>) attributes {dimension_semantics = [#tpu.dimension_semantics<parallel>], iteration_bounds = array<i64: 1>, scalar_prefetch = 0 : i64, scratch_operands = 0 : i64, tpu.core_type = #tpu.core_type<tc>, window_params = [{transform_indices = @transform_0, window_bounds = array<i64: 2, 512>}, {transform_indices = @transform_1, window_bounds = array<i64: 1, 2, 512>}]} {
    %c0 = arith.constant 0 : index
    %c0_0 = arith.constant 0 : index
    %0 = vector.load %arg1[%c0, %c0_0] : memref<2x512xf32, #tpu.memory_space<vmem>>, vector<2x512xf32>
    %cst = arith.constant dense<0.000000e+00> : vector<512xf32>
    %1 = vector.multi_reduction <add>, %0, %cst [0] : vector<2x512xf32> to vector<512xf32>
    %2 = vector.shape_cast %1 : vector<512xf32> to vector<1x512xf32>
    %3 = arith.mulf %0, %0 : vector<2x512xf32>
    %cst_1 = arith.constant dense<0.000000e+00> : vector<512xf32>
    %4 = vector.multi_reduction <add>, %3, %cst_1 [0] : vector<2x512xf32> to vector<512xf32>
    %5 = vector.shape_cast %4 : vector<512xf32> to vector<1x512xf32>
    %6 = tpu.concatenate %2, %5 in 0 : vector<1x512xf32>, vector<1x512xf32> -> vector<2x512xf32>
    %c0_2 = arith.constant 0 : index
    %c0_3 = arith.constant 0 : index
    %c0_4 = arith.constant 0 : index
    %7 = vector.load %arg2[%c0_2, %c0_3, %c0_4] : memref<1x2x512xf32, #tpu.memory_space<vmem>>, vector<1x2x512xf32>
    %8 = vector.shape_cast %7 : vector<1x2x512xf32> to vector<2x512xf32>
    %9 = vector.shape_cast %6 : vector<2x512xf32> to vector<1x2x512xf32>
    tpu.vector_store %arg2[%c0_2, %c0_3, %c0_4], %9 {strides = array<i32>} : memref<1x2x512xf32, #tpu.memory_space<vmem>>, vector<1x2x512xf32>,
    return
  }
  func.func @transform_0(%arg0: i32) -> (i32, i32) {
    %c0_i32 = arith.constant 0 : i32
    %c0_i32_0 = arith.constant 0 : i32
    return %arg0, %c0_i32 : i32, i32
  }
  func.func @transform_1(%arg0: i32) -> (i32, i32, i32) {
    %c0_i32 = arith.constant 0 : i32
    %c0_i32_0 = arith.constant 0 : i32
    %c0_i32_1 = arith.constant 0 : i32
    return %arg0, %c0_i32, %c0_i32_0 : i32, i32, i32
  }
}

module attributes {stable_mosaic.version = 11 : i64} {
  func.func @_bn_apply_kernel(%arg0: i32, %arg1: memref<2x512xf32, #tpu.memory_space<vmem>>, %arg2: memref<1x512xf32, #tpu.memory_space<vmem>>, %arg3: memref<1x512xf32, #tpu.memory_space<vmem>>, %arg4: memref<2x512xf32, #tpu.memory_space<vmem>>) attributes {dimension_semantics = [#tpu.dimension_semantics<parallel>], iteration_bounds = array<i64: 1>, scalar_prefetch = 0 : i64, scratch_operands = 0 : i64, tpu.core_type = #tpu.core_type<tc>, window_params = [{transform_indices = @transform_0, window_bounds = array<i64: 2, 512>}, {pipeline_mode = #tpu.pipeline_mode<synchronous>, transform_indices = @transform_1, window_bounds = array<i64: 1, 512>}, {pipeline_mode = #tpu.pipeline_mode<synchronous>, transform_indices = @transform_2, window_bounds = array<i64: 1, 512>}, {transform_indices = @transform_3, window_bounds = array<i64: 2, 512>}]} {
    %c0 = arith.constant 0 : index
    %c0_0 = arith.constant 0 : index
    %0 = vector.load %arg1[%c0, %c0_0] : memref<2x512xf32, #tpu.memory_space<vmem>>, vector<2x512xf32>
    %c0_1 = arith.constant 0 : index
    %c0_2 = arith.constant 0 : index
    %1 = vector.load %arg2[%c0_1, %c0_2] : memref<1x512xf32, #tpu.memory_space<vmem>>, vector<1x512xf32>
    %2 = vector.broadcast %1 : vector<1x512xf32> to vector<2x512xf32>
    %3 = arith.mulf %0, %2 : vector<2x512xf32>
    %c0_3 = arith.constant 0 : index
    %c0_4 = arith.constant 0 : index
    %4 = vector.load %arg3[%c0_3, %c0_4] : memref<1x512xf32, #tpu.memory_space<vmem>>, vector<1x512xf32>
    %5 = vector.broadcast %4 : vector<1x512xf32> to vector<2x512xf32>
    %6 = arith.addf %3, %5 : vector<2x512xf32>
    %c0_5 = arith.constant 0 : index
    %c0_6 = arith.constant 0 : index
    %7 = vector.load %arg4[%c0_5, %c0_6] : memref<2x512xf32, #tpu.memory_space<vmem>>, vector<2x512xf32>
    tpu.vector_store %arg4[%c0_5, %c0_6], %6 {strides = array<i32>} : memref<2x512xf32, #tpu.memory_space<vmem>>, vector<2x512xf32>,
    return
  }
  func.func @transform_0(%arg0: i32) -> (i32, i32) {
    %c0_i32 = arith.constant 0 : i32
    %c0_i32_0 = arith.constant 0 : i32
    return %arg0, %c0_i32 : i32, i32
  }
  func.func @transform_1(%arg0: i32) -> (i32, i32) {
    %c0_i32 = arith.constant 0 : i32
    %c0_i32_0 = arith.constant 0 : i32
    %c0_i32_1 = arith.constant 0 : i32
    return %c0_i32, %c0_i32_0 : i32, i32
  }
  func.func @transform_2(%arg0: i32) -> (i32, i32) {
    %c0_i32 = arith.constant 0 : i32
    %c0_i32_0 = arith.constant 0 : i32
    %c0_i32_1 = arith.constant 0 : i32
    return %c0_i32, %c0_i32_0 : i32, i32
  }
  func.func @transform_3(%arg0: i32) -> (i32, i32) {
    %c0_i32 = arith.constant 0 : i32
    %c0_i32_0 = arith.constant 0 : i32
    return %arg0, %c0_i32 : i32, i32
  }
}

module attributes {stable_mosaic.version = 11 : i64} {
  func.func @_bn_apply_kernel(%arg0: i32, %arg1: memref<2x512xf32, #tpu.memory_space<vmem>>, %arg2: memref<1x512xf32, #tpu.memory_space<vmem>>, %arg3: memref<1x512xf32, #tpu.memory_space<vmem>>, %arg4: memref<2x512xf32, #tpu.memory_space<vmem>>) attributes {dimension_semantics = [#tpu.dimension_semantics<parallel>], iteration_bounds = array<i64: 1>, scalar_prefetch = 0 : i64, scratch_operands = 0 : i64, tpu.core_type = #tpu.core_type<tc>, window_params = [{transform_indices = @transform_0, window_bounds = array<i64: 2, 512>}, {pipeline_mode = #tpu.pipeline_mode<synchronous>, transform_indices = @transform_1, window_bounds = array<i64: 1, 512>}, {pipeline_mode = #tpu.pipeline_mode<synchronous>, transform_indices = @transform_2, window_bounds = array<i64: 1, 512>}, {transform_indices = @transform_3, window_bounds = array<i64: 2, 512>}]} {
    %c0 = arith.constant 0 : index
    %c0_0 = arith.constant 0 : index
    %0 = vector.load %arg1[%c0, %c0_0] : memref<2x512xf32, #tpu.memory_space<vmem>>, vector<2x512xf32>
    %c0_1 = arith.constant 0 : index
    %c0_2 = arith.constant 0 : index
    %1 = vector.load %arg2[%c0_1, %c0_2] : memref<1x512xf32, #tpu.memory_space<vmem>>, vector<1x512xf32>
    %2 = vector.broadcast %1 : vector<1x512xf32> to vector<2x512xf32>
    %3 = arith.mulf %0, %2 : vector<2x512xf32>
    %c0_3 = arith.constant 0 : index
    %c0_4 = arith.constant 0 : index
    %4 = vector.load %arg3[%c0_3, %c0_4] : memref<1x512xf32, #tpu.memory_space<vmem>>, vector<1x512xf32>
    %5 = vector.broadcast %4 : vector<1x512xf32> to vector<2x512xf32>
    %6 = arith.addf %3, %5 : vector<2x512xf32>
    %cst = arith.constant 0.000000e+00 : f32
    %7 = vector.broadcast %cst : f32 to vector<2x512xf32>
    %8 = arith.maximumf %6, %7 : vector<2x512xf32>
    %c0_5 = arith.constant 0 : index
    %c0_6 = arith.constant 0 : index
    %9 = vector.load %arg4[%c0_5, %c0_6] : memref<2x512xf32, #tpu.memory_space<vmem>>, vector<2x512xf32>
    tpu.vector_store %arg4[%c0_5, %c0_6], %8 {strides = array<i32>} : memref<2x512xf32, #tpu.memory_space<vmem>>, vector<2x512xf32>,
    return
  }
  func.func @transform_0(%arg0: i32) -> (i32, i32) {
    %c0_i32 = arith.constant 0 : i32
    %c0_i32_0 = arith.constant 0 : i32
    return %arg0, %c0_i32 : i32, i32
  }
  func.func @transform_1(%arg0: i32) -> (i32, i32) {
    %c0_i32 = arith.constant 0 : i32
    %c0_i32_0 = arith.constant 0 : i32
    %c0_i32_1 = arith.constant 0 : i32
    return %c0_i32, %c0_i32_0 : i32, i32
  }
  func.func @transform_2(%arg0: i32) -> (i32, i32) {
    %c0_i32 = arith.constant 0 : i32
    %c0_i32_0 = arith.constant 0 : i32
    %c0_i32_1 = arith.constant 0 : i32
    return %c0_i32, %c0_i32_0 : i32, i32
  }
  func.func @transform_3(%arg0: i32) -> (i32, i32) {
    %c0_i32 = arith.constant 0 : i32
    %c0_i32_0 = arith.constant 0 : i32
    return %arg0, %c0_i32 : i32, i32
  }
}

module attributes {stable_mosaic.version = 11 : i64} {
  func.func @_bn_apply_kernel(%arg0: i32, %arg1: memref<2x512xf32, #tpu.memory_space<vmem>>, %arg2: memref<1x512xf32, #tpu.memory_space<vmem>>, %arg3: memref<1x512xf32, #tpu.memory_space<vmem>>, %arg4: memref<2x512xf32, #tpu.memory_space<vmem>>, %arg5: memref<2x512xf32, #tpu.memory_space<vmem>>) attributes {dimension_semantics = [#tpu.dimension_semantics<parallel>], iteration_bounds = array<i64: 1>, scalar_prefetch = 0 : i64, scratch_operands = 0 : i64, tpu.core_type = #tpu.core_type<tc>, window_params = [{transform_indices = @transform_0, window_bounds = array<i64: 2, 512>}, {pipeline_mode = #tpu.pipeline_mode<synchronous>, transform_indices = @transform_1, window_bounds = array<i64: 1, 512>}, {pipeline_mode = #tpu.pipeline_mode<synchronous>, transform_indices = @transform_2, window_bounds = array<i64: 1, 512>}, {transform_indices = @transform_3, window_bounds = array<i64: 2, 512>}, {transform_indices = @transform_4, window_bounds = array<i64: 2, 512>}]} {
    %c0 = arith.constant 0 : index
    %c0_0 = arith.constant 0 : index
    %0 = vector.load %arg1[%c0, %c0_0] : memref<2x512xf32, #tpu.memory_space<vmem>>, vector<2x512xf32>
    %c0_1 = arith.constant 0 : index
    %c0_2 = arith.constant 0 : index
    %1 = vector.load %arg2[%c0_1, %c0_2] : memref<1x512xf32, #tpu.memory_space<vmem>>, vector<1x512xf32>
    %2 = vector.broadcast %1 : vector<1x512xf32> to vector<2x512xf32>
    %3 = arith.mulf %0, %2 : vector<2x512xf32>
    %c0_3 = arith.constant 0 : index
    %c0_4 = arith.constant 0 : index
    %4 = vector.load %arg3[%c0_3, %c0_4] : memref<1x512xf32, #tpu.memory_space<vmem>>, vector<1x512xf32>
    %5 = vector.broadcast %4 : vector<1x512xf32> to vector<2x512xf32>
    %6 = arith.addf %3, %5 : vector<2x512xf32>
    %c0_5 = arith.constant 0 : index
    %c0_6 = arith.constant 0 : index
    %7 = vector.load %arg4[%c0_5, %c0_6] : memref<2x512xf32, #tpu.memory_space<vmem>>, vector<2x512xf32>
    %8 = arith.addf %6, %7 : vector<2x512xf32>
    %cst = arith.constant 0.000000e+00 : f32
    %9 = vector.broadcast %cst : f32 to vector<2x512xf32>
    %10 = arith.maximumf %8, %9 : vector<2x512xf32>
    %c0_7 = arith.constant 0 : index
    %c0_8 = arith.constant 0 : index
    %11 = vector.load %arg5[%c0_7, %c0_8] : memref<2x512xf32, #tpu.memory_space<vmem>>, vector<2x512xf32>
    tpu.vector_store %arg5[%c0_7, %c0_8], %10 {strides = array<i32>} : memref<2x512xf32, #tpu.memory_space<vmem>>, vector<2x512xf32>,
    return
  }
  func.func @transform_0(%arg0: i32) -> (i32, i32) {
    %c0_i32 = arith.constant 0 : i32
    %c0_i32_0 = arith.constant 0 : i32
    return %arg0, %c0_i32 : i32, i32
  }
  func.func @transform_1(%arg0: i32) -> (i32, i32) {
    %c0_i32 = arith.constant 0 : i32
    %c0_i32_0 = arith.constant 0 : i32
    %c0_i32_1 = arith.constant 0 : i32
    return %c0_i32, %c0_i32_0 : i32, i32
  }
  func.func @transform_2(%arg0: i32) -> (i32, i32) {
    %c0_i32 = arith.constant 0 : i32
    %c0_i32_0 = arith.constant 0 : i32
    %c0_i32_1 = arith.constant 0 : i32
    return %c0_i32, %c0_i32_0 : i32, i32
  }
  func.func @transform_3(%arg0: i32) -> (i32, i32) {
    %c0_i32 = arith.constant 0 : i32
    %c0_i32_0 = arith.constant 0 : i32
    return %arg0, %c0_i32 : i32, i32
  }
  func.func @transform_4(%arg0: i32) -> (i32, i32) {
    %c0_i32 = arith.constant 0 : i32
    %c0_i32_0 = arith.constant 0 : i32
    return %arg0, %c0_i32 : i32, i32
  }
}

module attributes {stable_mosaic.version = 11 : i64} {
  func.func @_dec_mm_kernel(%arg0: i32, %arg1: i32, %arg2: i32, %arg3: i32, %arg4: memref<1x16x3xbf16, #tpu.memory_space<vmem>>, %arg5: memref<3x128xbf16, #tpu.memory_space<vmem>>, %arg6: memref<1x1x128xf32, #tpu.memory_space<vmem>>, %arg7: memref<1x16x128xf32, #tpu.memory_space<vmem>>, %arg8: memref<1x1x2x128xf32, #tpu.memory_space<vmem>>, %arg9: memref<16x128xf32, #tpu.memory_space<vmem>>) attributes {dimension_semantics = [#tpu.dimension_semantics<parallel>, #tpu.dimension_semantics<parallel>, #tpu.dimension_semantics<parallel>, #tpu.dimension_semantics<arbitrary>], iteration_bounds = array<i64: 2, 1, 1, 1>, scalar_prefetch = 0 : i64, scratch_operands = 1 : i64, tpu.core_type = #tpu.core_type<tc>, window_params = [{transform_indices = @transform_0, window_bounds = array<i64: 1, 16, 3>}, {transform_indices = @transform_1, window_bounds = array<i64: 3, 128>}, {transform_indices = @transform_2, window_bounds = array<i64: 1, 1, 128>}, {transform_indices = @transform_3, window_bounds = array<i64: 1, 16, 128>}, {transform_indices = @transform_4, window_bounds = array<i64: 1, 1, 2, 128>}]} {
    %c0_i32 = arith.constant 0 : i32
    %0 = arith.cmpi eq, %arg3, %c0_i32 : i32
    %1 = arith.extui %0 : i1 to i32
    %c0_i32_0 = arith.constant 0 : i32
    %2 = arith.cmpi ne, %1, %c0_i32_0 : i32
    scf.if %2 {
      %c0_11 = arith.constant 0 : index
      %c0_12 = arith.constant 0 : index
      %c0_13 = arith.constant 0 : index
      %13 = vector.load %arg6[%c0_11, %c0_12, %c0_13] : memref<1x1x128xf32, #tpu.memory_space<vmem>>, vector<1x1x128xf32>
      %14 = vector.shape_cast %13 : vector<1x1x128xf32> to vector<1x128xf32>
      %15 = vector.shape_cast %14 : vector<1x128xf32> to vector<1x128xf32>
      %16 = vector.broadcast %15 : vector<1x128xf32> to vector<16x128xf32>
      %c0_14 = arith.constant 0 : index
      %c0_15 = arith.constant 0 : index
      %17 = vector.load %arg9[%c0_14, %c0_15] : memref<16x128xf32, #tpu.memory_space<vmem>>, vector<16x128xf32>
      tpu.vector_store %arg9[%c0_14, %c0_15], %16 {strides = array<i32>} : memref<16x128xf32, #tpu.memory_space<vmem>>, vector<16x128xf32>,
    } else {
    }
    %c0 = arith.constant 0 : index
    %c0_1 = arith.constant 0 : index
    %3 = vector.load %arg9[%c0, %c0_1] : memref<16x128xf32, #tpu.memory_space<vmem>>, vector<16x128xf32>
    %c0_2 = arith.constant 0 : index
    %c0_3 = arith.constant 0 : index
    %c0_4 = arith.constant 0 : index
    %4 = vector.load %arg4[%c0_2, %c0_3, %c0_4] : memref<1x16x3xbf16, #tpu.memory_space<vmem>>, vector<1x16x3xbf16>
    %5 = vector.shape_cast %4 : vector<1x16x3xbf16> to vector<16x3xbf16>
    %c0_5 = arith.constant 0 : index
    %c0_6 = arith.constant 0 : index
    %6 = vector.load %arg5[%c0_5, %c0_6] : memref<3x128xbf16, #tpu.memory_space<vmem>>, vector<3x128xbf16>
    %cst = arith.constant dense<0.000000e+00> : vector<16x128xf32>
    %7 = tpu.matmul %5, %6, %cst {dimension_numbers = #tpu.dot_dimension_numbers<[1], [0], [0], [1], [0, 0, 1, 1], [], []>} : vector<16x3xbf16>, vector<3x128xbf16>, vector<16x128xf32> -> vector<16x128xf32>
    %8 = arith.addf %3, %7 : vector<16x128xf32>
    %c0_7 = arith.constant 0 : index
    %c0_8 = arith.constant 0 : index
    %9 = vector.load %arg9[%c0_7, %c0_8] : memref<16x128xf32, #tpu.memory_space<vmem>>, vector<16x128xf32>
    tpu.vector_store %arg9[%c0_7, %c0_8], %8 {strides = array<i32>} : memref<16x128xf32, #tpu.memory_space<vmem>>, vector<16x128xf32>,
    %c0_i32_9 = arith.constant 0 : i32
    %10 = arith.cmpi eq, %arg3, %c0_i32_9 : i32
    %11 = arith.extui %10 : i1 to i32
    %c0_i32_10 = arith.constant 0 : i32
    %12 = arith.cmpi ne, %11, %c0_i32_10 : i32
    scf.if %12 {
      %c0_11 = arith.constant 0 : index
      %c0_12 = arith.constant 0 : index
      %13 = vector.load %arg9[%c0_11, %c0_12] : memref<16x128xf32, #tpu.memory_space<vmem>>, vector<16x128xf32>
      %c0_13 = arith.constant 0 : index
      %c0_14 = arith.constant 0 : index
      %c0_15 = arith.constant 0 : index
      %14 = vector.load %arg7[%c0_13, %c0_14, %c0_15] : memref<1x16x128xf32, #tpu.memory_space<vmem>>, vector<1x16x128xf32>
      %15 = vector.shape_cast %14 : vector<1x16x128xf32> to vector<16x128xf32>
      %16 = vector.shape_cast %13 : vector<16x128xf32> to vector<1x16x128xf32>
      tpu.vector_store %arg7[%c0_13, %c0_14, %c0_15], %16 {strides = array<i32>} : memref<1x16x128xf32, #tpu.memory_space<vmem>>, vector<1x16x128xf32>,
      %cst_16 = arith.constant dense<0.000000e+00> : vector<128xf32>
      %17 = vector.multi_reduction <add>, %13, %cst_16 [0] : vector<16x128xf32> to vector<128xf32>
      %18 = vector.shape_cast %17 : vector<128xf32> to vector<1x128xf32>
      %19 = arith.mulf %13, %13 : vector<16x128xf32>
      %cst_17 = arith.constant dense<0.000000e+00> : vector<128xf32>
      %20 = vector.multi_reduction <add>, %19, %cst_17 [0] : vector<16x128xf32> to vector<128xf32>
      %21 = vector.shape_cast %20 : vector<128xf32> to vector<1x128xf32>
      %22 = tpu.concatenate %18, %21 in 0 : vector<1x128xf32>, vector<1x128xf32> -> vector<2x128xf32>
      %c0_18 = arith.constant 0 : index
      %c0_19 = arith.constant 0 : index
      %c0_20 = arith.constant 0 : index
      %c0_21 = arith.constant 0 : index
      %23 = vector.load %arg8[%c0_18, %c0_19, %c0_20, %c0_21] : memref<1x1x2x128xf32, #tpu.memory_space<vmem>>, vector<1x1x2x128xf32>
      %24 = vector.shape_cast %23 : vector<1x1x2x128xf32> to vector<2x128xf32>
      %25 = vector.shape_cast %22 : vector<2x128xf32> to vector<1x1x2x128xf32>
      tpu.vector_store %arg8[%c0_18, %c0_19, %c0_20, %c0_21], %25 {strides = array<i32>} : memref<1x1x2x128xf32, #tpu.memory_space<vmem>>, vector<1x1x2x128xf32>,
    } else {
    }
    return
  }
  func.func @transform_0(%arg0: i32, %arg1: i32, %arg2: i32, %arg3: i32) -> (i32, i32, i32) {
    %c0_i32 = arith.constant 0 : i32
    return %arg0, %arg1, %arg3 : i32, i32, i32
  }
  func.func @transform_1(%arg0: i32, %arg1: i32, %arg2: i32, %arg3: i32) -> (i32, i32) {
    %c0_i32 = arith.constant 0 : i32
    return %arg3, %arg2 : i32, i32
  }
  func.func @transform_2(%arg0: i32, %arg1: i32, %arg2: i32, %arg3: i32) -> (i32, i32, i32) {
    %c0_i32 = arith.constant 0 : i32
    %c0_i32_0 = arith.constant 0 : i32
    return %arg0, %c0_i32, %arg2 : i32, i32, i32
  }
  func.func @transform_3(%arg0: i32, %arg1: i32, %arg2: i32, %arg3: i32) -> (i32, i32, i32) {
    %c0_i32 = arith.constant 0 : i32
    return %arg0, %arg1, %arg2 : i32, i32, i32
  }
  func.func @transform_4(%arg0: i32, %arg1: i32, %arg2: i32, %arg3: i32) -> (i32, i32, i32, i32) {
    %c0_i32 = arith.constant 0 : i32
    %c0_i32_0 = arith.constant 0 : i32
    return %arg0, %arg1, %c0_i32, %arg2 : i32, i32, i32, i32
  }
}

module attributes {stable_mosaic.version = 11 : i64} {
  func.func @_bn_apply_kernel(%arg0: i32, %arg1: memref<32x128xf32, #tpu.memory_space<vmem>>, %arg2: memref<1x128xf32, #tpu.memory_space<vmem>>, %arg3: memref<1x128xf32, #tpu.memory_space<vmem>>, %arg4: memref<32x128xf32, #tpu.memory_space<vmem>>) attributes {dimension_semantics = [#tpu.dimension_semantics<parallel>], iteration_bounds = array<i64: 1>, scalar_prefetch = 0 : i64, scratch_operands = 0 : i64, tpu.core_type = #tpu.core_type<tc>, window_params = [{transform_indices = @transform_0, window_bounds = array<i64: 32, 128>}, {pipeline_mode = #tpu.pipeline_mode<synchronous>, transform_indices = @transform_1, window_bounds = array<i64: 1, 128>}, {pipeline_mode = #tpu.pipeline_mode<synchronous>, transform_indices = @transform_2, window_bounds = array<i64: 1, 128>}, {transform_indices = @transform_3, window_bounds = array<i64: 32, 128>}]} {
    %c0 = arith.constant 0 : index
    %c0_0 = arith.constant 0 : index
    %0 = vector.load %arg1[%c0, %c0_0] : memref<32x128xf32, #tpu.memory_space<vmem>>, vector<32x128xf32>
    %c0_1 = arith.constant 0 : index
    %c0_2 = arith.constant 0 : index
    %1 = vector.load %arg2[%c0_1, %c0_2] : memref<1x128xf32, #tpu.memory_space<vmem>>, vector<1x128xf32>
    %2 = vector.broadcast %1 : vector<1x128xf32> to vector<32x128xf32>
    %3 = arith.mulf %0, %2 : vector<32x128xf32>
    %c0_3 = arith.constant 0 : index
    %c0_4 = arith.constant 0 : index
    %4 = vector.load %arg3[%c0_3, %c0_4] : memref<1x128xf32, #tpu.memory_space<vmem>>, vector<1x128xf32>
    %5 = vector.broadcast %4 : vector<1x128xf32> to vector<32x128xf32>
    %6 = arith.addf %3, %5 : vector<32x128xf32>
    %cst = arith.constant 0.000000e+00 : f32
    %7 = vector.broadcast %cst : f32 to vector<32x128xf32>
    %8 = arith.maximumf %6, %7 : vector<32x128xf32>
    %c0_5 = arith.constant 0 : index
    %c0_6 = arith.constant 0 : index
    %9 = vector.load %arg4[%c0_5, %c0_6] : memref<32x128xf32, #tpu.memory_space<vmem>>, vector<32x128xf32>
    tpu.vector_store %arg4[%c0_5, %c0_6], %8 {strides = array<i32>} : memref<32x128xf32, #tpu.memory_space<vmem>>, vector<32x128xf32>,
    return
  }
  func.func @transform_0(%arg0: i32) -> (i32, i32) {
    %c0_i32 = arith.constant 0 : i32
    %c0_i32_0 = arith.constant 0 : i32
    return %arg0, %c0_i32 : i32, i32
  }
  func.func @transform_1(%arg0: i32) -> (i32, i32) {
    %c0_i32 = arith.constant 0 : i32
    %c0_i32_0 = arith.constant 0 : i32
    %c0_i32_1 = arith.constant 0 : i32
    return %c0_i32, %c0_i32_0 : i32, i32
  }
  func.func @transform_2(%arg0: i32) -> (i32, i32) {
    %c0_i32 = arith.constant 0 : i32
    %c0_i32_0 = arith.constant 0 : i32
    %c0_i32_1 = arith.constant 0 : i32
    return %c0_i32, %c0_i32_0 : i32, i32
  }
  func.func @transform_3(%arg0: i32) -> (i32, i32) {
    %c0_i32 = arith.constant 0 : i32
    %c0_i32_0 = arith.constant 0 : i32
    return %arg0, %c0_i32 : i32, i32
  }
}

module attributes {stable_mosaic.version = 11 : i64} {
  func.func @_dec_mm_kernel(%arg0: i32, %arg1: i32, %arg2: i32, %arg3: i32, %arg4: memref<1x16x128xbf16, #tpu.memory_space<vmem>>, %arg5: memref<128x128xbf16, #tpu.memory_space<vmem>>, %arg6: memref<1x16x3xbf16, #tpu.memory_space<vmem>>, %arg7: memref<3x128xbf16, #tpu.memory_space<vmem>>, %arg8: memref<1x1x128xf32, #tpu.memory_space<vmem>>, %arg9: memref<1x16x128xf32, #tpu.memory_space<vmem>>, %arg10: memref<1x1x2x128xf32, #tpu.memory_space<vmem>>, %arg11: memref<16x128xf32, #tpu.memory_space<vmem>>) attributes {dimension_semantics = [#tpu.dimension_semantics<parallel>, #tpu.dimension_semantics<parallel>, #tpu.dimension_semantics<parallel>, #tpu.dimension_semantics<arbitrary>], iteration_bounds = array<i64: 2, 1, 1, 1>, scalar_prefetch = 0 : i64, scratch_operands = 1 : i64, tpu.core_type = #tpu.core_type<tc>, window_params = [{transform_indices = @transform_0, window_bounds = array<i64: 1, 16, 128>}, {transform_indices = @transform_1, window_bounds = array<i64: 128, 128>}, {transform_indices = @transform_2, window_bounds = array<i64: 1, 16, 3>}, {transform_indices = @transform_3, window_bounds = array<i64: 3, 128>}, {transform_indices = @transform_4, window_bounds = array<i64: 1, 1, 128>}, {transform_indices = @transform_5, window_bounds = array<i64: 1, 16, 128>}, {transform_indices = @transform_6, window_bounds = array<i64: 1, 1, 2, 128>}]} {
    %c0_i32 = arith.constant 0 : i32
    %0 = arith.cmpi eq, %arg3, %c0_i32 : i32
    %1 = arith.extui %0 : i1 to i32
    %c0_i32_0 = arith.constant 0 : i32
    %2 = arith.cmpi ne, %1, %c0_i32_0 : i32
    scf.if %2 {
      %c0_11 = arith.constant 0 : index
      %c0_12 = arith.constant 0 : index
      %c0_13 = arith.constant 0 : index
      %13 = vector.load %arg8[%c0_11, %c0_12, %c0_13] : memref<1x1x128xf32, #tpu.memory_space<vmem>>, vector<1x1x128xf32>
      %14 = vector.shape_cast %13 : vector<1x1x128xf32> to vector<1x128xf32>
      %15 = vector.shape_cast %14 : vector<1x128xf32> to vector<1x128xf32>
      %16 = vector.broadcast %15 : vector<1x128xf32> to vector<16x128xf32>
      %c0_14 = arith.constant 0 : index
      %c0_15 = arith.constant 0 : index
      %c0_16 = arith.constant 0 : index
      %17 = vector.load %arg6[%c0_14, %c0_15, %c0_16] : memref<1x16x3xbf16, #tpu.memory_space<vmem>>, vector<1x16x3xbf16>
      %18 = vector.shape_cast %17 : vector<1x16x3xbf16> to vector<16x3xbf16>
      %c0_17 = arith.constant 0 : index
      %c0_18 = arith.constant 0 : index
      %19 = vector.load %arg7[%c0_17, %c0_18] : memref<3x128xbf16, #tpu.memory_space<vmem>>, vector<3x128xbf16>
      %cst_19 = arith.constant dense<0.000000e+00> : vector<16x128xf32>
      %20 = tpu.matmul %18, %19, %cst_19 {dimension_numbers = #tpu.dot_dimension_numbers<[1], [0], [0], [1], [0, 0, 1, 1], [], []>} : vector<16x3xbf16>, vector<3x128xbf16>, vector<16x128xf32> -> vector<16x128xf32>
      %21 = arith.addf %16, %20 : vector<16x128xf32>
      %c0_20 = arith.constant 0 : index
      %c0_21 = arith.constant 0 : index
      %22 = vector.load %arg11[%c0_20, %c0_21] : memref<16x128xf32, #tpu.memory_space<vmem>>, vector<16x128xf32>
      tpu.vector_store %arg11[%c0_20, %c0_21], %21 {strides = array<i32>} : memref<16x128xf32, #tpu.memory_space<vmem>>, vector<16x128xf32>,
    } else {
    }
    %c0 = arith.constant 0 : index
    %c0_1 = arith.constant 0 : index
    %3 = vector.load %arg11[%c0, %c0_1] : memref<16x128xf32, #tpu.memory_space<vmem>>, vector<16x128xf32>
    %c0_2 = arith.constant 0 : index
    %c0_3 = arith.constant 0 : index
    %c0_4 = arith.constant 0 : index
    %4 = vector.load %arg4[%c0_2, %c0_3, %c0_4] : memref<1x16x128xbf16, #tpu.memory_space<vmem>>, vector<1x16x128xbf16>
    %5 = vector.shape_cast %4 : vector<1x16x128xbf16> to vector<16x128xbf16>
    %c0_5 = arith.constant 0 : index
    %c0_6 = arith.constant 0 : index
    %6 = vector.load %arg5[%c0_5, %c0_6] : memref<128x128xbf16, #tpu.memory_space<vmem>>, vector<128x128xbf16>
    %cst = arith.constant dense<0.000000e+00> : vector<16x128xf32>
    %7 = tpu.matmul %5, %6, %cst {dimension_numbers = #tpu.dot_dimension_numbers<[1], [0], [0], [1], [0, 0, 1, 1], [], []>} : vector<16x128xbf16>, vector<128x128xbf16>, vector<16x128xf32> -> vector<16x128xf32>
    %8 = arith.addf %3, %7 : vector<16x128xf32>
    %c0_7 = arith.constant 0 : index
    %c0_8 = arith.constant 0 : index
    %9 = vector.load %arg11[%c0_7, %c0_8] : memref<16x128xf32, #tpu.memory_space<vmem>>, vector<16x128xf32>
    tpu.vector_store %arg11[%c0_7, %c0_8], %8 {strides = array<i32>} : memref<16x128xf32, #tpu.memory_space<vmem>>, vector<16x128xf32>,
    %c0_i32_9 = arith.constant 0 : i32
    %10 = arith.cmpi eq, %arg3, %c0_i32_9 : i32
    %11 = arith.extui %10 : i1 to i32
    %c0_i32_10 = arith.constant 0 : i32
    %12 = arith.cmpi ne, %11, %c0_i32_10 : i32
    scf.if %12 {
      %c0_11 = arith.constant 0 : index
      %c0_12 = arith.constant 0 : index
      %13 = vector.load %arg11[%c0_11, %c0_12] : memref<16x128xf32, #tpu.memory_space<vmem>>, vector<16x128xf32>
      %c0_13 = arith.constant 0 : index
      %c0_14 = arith.constant 0 : index
      %c0_15 = arith.constant 0 : index
      %14 = vector.load %arg9[%c0_13, %c0_14, %c0_15] : memref<1x16x128xf32, #tpu.memory_space<vmem>>, vector<1x16x128xf32>
      %15 = vector.shape_cast %14 : vector<1x16x128xf32> to vector<16x128xf32>
      %16 = vector.shape_cast %13 : vector<16x128xf32> to vector<1x16x128xf32>
      tpu.vector_store %arg9[%c0_13, %c0_14, %c0_15], %16 {strides = array<i32>} : memref<1x16x128xf32, #tpu.memory_space<vmem>>, vector<1x16x128xf32>,
      %cst_16 = arith.constant dense<0.000000e+00> : vector<128xf32>
      %17 = vector.multi_reduction <add>, %13, %cst_16 [0] : vector<16x128xf32> to vector<128xf32>
      %18 = vector.shape_cast %17 : vector<128xf32> to vector<1x128xf32>
      %19 = arith.mulf %13, %13 : vector<16x128xf32>
      %cst_17 = arith.constant dense<0.000000e+00> : vector<128xf32>
      %20 = vector.multi_reduction <add>, %19, %cst_17 [0] : vector<16x128xf32> to vector<128xf32>
      %21 = vector.shape_cast %20 : vector<128xf32> to vector<1x128xf32>
      %22 = tpu.concatenate %18, %21 in 0 : vector<1x128xf32>, vector<1x128xf32> -> vector<2x128xf32>
      %c0_18 = arith.constant 0 : index
      %c0_19 = arith.constant 0 : index
      %c0_20 = arith.constant 0 : index
      %c0_21 = arith.constant 0 : index
      %23 = vector.load %arg10[%c0_18, %c0_19, %c0_20, %c0_21] : memref<1x1x2x128xf32, #tpu.memory_space<vmem>>, vector<1x1x2x128xf32>
      %24 = vector.shape_cast %23 : vector<1x1x2x128xf32> to vector<2x128xf32>
      %25 = vector.shape_cast %22 : vector<2x128xf32> to vector<1x1x2x128xf32>
      tpu.vector_store %arg10[%c0_18, %c0_19, %c0_20, %c0_21], %25 {strides = array<i32>} : memref<1x1x2x128xf32, #tpu.memory_space<vmem>>, vector<1x1x2x128xf32>,
    } else {
    }
    return
  }
  func.func @transform_0(%arg0: i32, %arg1: i32, %arg2: i32, %arg3: i32) -> (i32, i32, i32) {
    %c0_i32 = arith.constant 0 : i32
    return %arg0, %arg1, %arg3 : i32, i32, i32
  }
  func.func @transform_1(%arg0: i32, %arg1: i32, %arg2: i32, %arg3: i32) -> (i32, i32) {
    %c0_i32 = arith.constant 0 : i32
    return %arg3, %arg2 : i32, i32
  }
  func.func @transform_2(%arg0: i32, %arg1: i32, %arg2: i32, %arg3: i32) -> (i32, i32, i32) {
    %c0_i32 = arith.constant 0 : i32
    %c0_i32_0 = arith.constant 0 : i32
    return %arg0, %arg1, %c0_i32 : i32, i32, i32
  }
  func.func @transform_3(%arg0: i32, %arg1: i32, %arg2: i32, %arg3: i32) -> (i32, i32) {
    %c0_i32 = arith.constant 0 : i32
    %c0_i32_0 = arith.constant 0 : i32
    return %c0_i32, %arg2 : i32, i32
  }
  func.func @transform_4(%arg0: i32, %arg1: i32, %arg2: i32, %arg3: i32) -> (i32, i32, i32) {
    %c0_i32 = arith.constant 0 : i32
    %c0_i32_0 = arith.constant 0 : i32
    return %arg0, %c0_i32, %arg2 : i32, i32, i32
  }
  func.func @transform_5(%arg0: i32, %arg1: i32, %arg2: i32, %arg3: i32) -> (i32, i32, i32) {
    %c0_i32 = arith.constant 0 : i32
    return %arg0, %arg1, %arg2 : i32, i32, i32
  }
  func.func @transform_6(%arg0: i32, %arg1: i32, %arg2: i32, %arg3: i32) -> (i32, i32, i32, i32) {
    %c0_i32 = arith.constant 0 : i32
    %c0_i32_0 = arith.constant 0 : i32
    return %arg0, %arg1, %c0_i32, %arg2 : i32, i32, i32, i32
  }
}

</mosaic_0001>

<bundles_post_ra>
// kernel: _lambda_.47
= control target key start
LH: loop header
LB: loop body
LE: loop exit
PB: predicated region body
PF: predicated region fallthrough
CT: control target
= control target key end

     0   :  { %vm92_vm0 = vcmask 523264   ;;  %s271_s0 = inlined_call_operand.vmem [shape: f32[128,64], index: 0, kind: input, shape index: {}]   ;;  %s272_s1 = inlined_call_operand.vmem [shape: f32[1,64], index: 1, kind: input, shape index: {}]   ;;  %s273_s2 = inlined_call_operand.vmem [shape: f32[1,64], index: 2, kind: input, shape index: {}]   ;;  %s274_s3 = inlined_call_operand.vmem [shape: f32[128,64], index: 3, kind: output, shape index: {}]  }
   0x1   :  { %v14_v0 = vld [vmem:[%s271_s0] sm:$0xff]  ;;  %v15_v4 = vld [vmem:[%s271_s0 + $0x8] sm:$0xff]  ;;  %v16_v5 = vld [vmem:[%s271_s0 + $0x10] sm:$0xff] }
   0x2   :  { %v113_v1 = vld [vmem:[%s272_s1] ss:$0 sm:$0xff]  ;;  %v17_v6 = vld [vmem:[%s271_s0 + $0x18] sm:$0xff]  ;;  %v19_v11 = vld [vmem:[%s271_s0 + $0x28] sm:$0xff] }
   0x3   :  { %v144_v2 = vld [vmem:[%s273_s2] ss:$0 sm:$0xff]  ;;  %v37_v3 = vmul.f32 %v113_v1, %v14_v0  ;;  %v38_v7 = vmul.f32 %v113_v1, %v15_v4  ;;  %v39_v8 = vmul.f32 %v113_v1, %v16_v5  ;;  %v40_v9 = vmul.f32 %v113_v1, %v17_v6  ;;  %v20_v12 = vld [vmem:[%s271_s0 + $0x30] sm:$0xff]  ;;  %v21_v17 = vld [vmem:[%s271_s0 + $0x38] sm:$0xff] }
   0x4   :  { %v18_v10 = vld [vmem:[%s271_s0 + $0x20] sm:$0xff]  ;;  %v42_v15 = vmul.f32 %v113_v1, %v19_v11  ;;  %v43_v16 = vmul.f32 %v113_v1, %v20_v12  ;;  %v44_v21 = vmul.f32 %v113_v1, %v21_v17  ;;  %v23_v27 = vld [vmem:[%s271_s0 + $0x48] sm:$0xff]  ;;  %v24_v28 = vld [vmem:[%s271_s0 + $0x50] sm:$0xff] }
   0x5   :  { %v60_v13 = vadd.f32 %v144_v2, %v37_v3  ;;  %v41_v14 = vmul.f32 %v113_v1, %v18_v10  ;;  %v61_v18 = vadd.f32 %v144_v2, %v38_v7  ;;  %v62_v19 = vadd.f32 %v144_v2, %v39_v8  ;;  %v22_v22 = vld [vmem:[%s271_s0 + $0x40] sm:$0xff]  ;;  %v25_v29 = vld [vmem:[%s271_s0 + $0x58] sm:$0xff]  ;;  %v27_v35 = vld [vmem:[%s271_s0 + $0x68] sm:$0xff] }
   0x6   :  { %v63_v20 = vadd.f32 %v144_v2, %v40_v9  ;;  %v65_v25 = vadd.f32 %v144_v2, %v42_v15  ;;  %v66_v26 = vadd.f32 %v144_v2, %v43_v16  ;;  %v67_v33 = vadd.f32 %v144_v2, %v44_v21  ;;  %v26_v34 = vld [vmem:[%s271_s0 + $0x60] sm:$0xff]  ;;  %v28_v36 = vld [vmem:[%s271_s0 + $0x70] sm:$0xff]  ;;  %v29_v41 = vld [vmem:[%s271_s0 + $0x78] sm:$0xff] }
   0x7   :  { %v76_v23 = vmax.f32 %v60_v13, 0.0  ;;  %v64_v24 = vadd.f32 %v144_v2, %v41_v14  ;;  %v77_v30 = vmax.f32 %v61_v18, 0.0  ;;  %v78_v31 = vmax.f32 %v62_v19, 0.0 }
   0x8   :  { %v79_v32 = vmax.f32 %v63_v20, 0.0  ;;  %v81_v38 = vmax.f32 %v65_v25, 0.0  ;;  %v82_v39 = vmax.f32 %v66_v26, 0.0  ;;  %v45_v40 = vmul.f32 %v113_v1, %v22_v22 }
   0x9   :  { %93 = vst.msk [vmem:[%s274_s3] sm:$0xff] %vm92_vm0, %v76_v23  ;;  %v80_v37 = vmax.f32 %v64_v24, 0.0  ;;  %94 = vst.msk [vmem:[%s274_s3 + $0x8] sm:$0xff] %vm92_vm0, %v77_v30  ;;  %v83_v42 = vmax.f32 %v67_v33, 0.0  ;;  %v46_v43 = vmul.f32 %v113_v1, %v23_v27  ;;  %v47_v44 = vmul.f32 %v113_v1, %v24_v28 }
   0xa   :  { %95 = vst.msk [vmem:[%s274_s3 + $0x10] sm:$0xff] %vm92_vm0, %v78_v31  ;;  %96 = vst.msk [vmem:[%s274_s3 + $0x18] sm:$0xff] %vm92_vm0, %v79_v32  ;;  %v48_v45 = vmul.f32 %v113_v1, %v25_v29  ;;  %v68_v46 = vadd.f32 %v144_v2, %v45_v40  ;;  %v49_v47 = vmul.f32 %v113_v1, %v26_v34 }
   0xb   :  { %97 = vst.msk [vmem:[%s274_s3 + $0x20] sm:$0xff] %vm92_vm0, %v80_v37  ;;  %98 = vst.msk [vmem:[%s274_s3 + $0x28] sm:$0xff] %vm92_vm0, %v81_v38  ;;  %v50_v48 = vmul.f32 %v113_v1, %v27_v35  ;;  %v51_v49 = vmul.f32 %v113_v1, %v28_v36  ;;  %v69_v50 = vadd.f32 %v144_v2, %v46_v43 }
   0xc   :  { %99 = vst.msk [vmem:[%s274_s3 + $0x30] sm:$0xff] %vm92_vm0, %v82_v39  ;;  %100 = vst.msk [vmem:[%s274_s3 + $0x38] sm:$0xff] %vm92_vm0, %v83_v42  ;;  %v70_v51 = vadd.f32 %v144_v2, %v47_v44  ;;  %v71_v52 = vadd.f32 %v144_v2, %v48_v45  ;;  %v52_v53 = vmul.f32 %v113_v1, %v29_v41  ;;  %v84_v54 = vmax.f32 %v68_v46, 0.0 }
   0xd   :  { %v72_v55 = vadd.f32 %v144_v2, %v49_v47  ;;  %v73_v56 = vadd.f32 %v144_v2, %v50_v48  ;;  %v74_v57 = vadd.f32 %v144_v2, %v51_v49  ;;  %v85_v58 = vmax.f32 %v69_v50, 0.0 }
   0xe   :  { %v86_v59 = vmax.f32 %v70_v51, 0.0  ;;  %v87_v60 = vmax.f32 %v71_v52, 0.0  ;;  %v75_v61 = vadd.f32 %v144_v2, %v52_v53  ;;  %101 = vst.msk [vmem:[%s274_s3 + $0x40] sm:$0xff] %vm92_vm0, %v84_v54 }
   0xf   :  { %v88_v62 = vmax.f32 %v72_v55, 0.0  ;;  %v89_v63 = vmax.f32 %v73_v56, 0.0  ;;  %v90_v0 = vmax.f32 %v74_v57, 0.0  ;;  %102 = vst.msk [vmem:[%s274_s3 + $0x48] sm:$0xff] %vm92_vm0, %v85_v58 }
  0x10   :  { %103 = vst.msk [vmem:[%s274_s3 + $0x50] sm:$0xff] %vm92_vm0, %v86_v59  ;;  %104 = vst.msk [vmem:[%s274_s3 + $0x58] sm:$0xff] %vm92_vm0, %v87_v60  ;;  %v91_v1 = vmax.f32 %v75_v61, 0.0 }
  0x11   :  { %105 = vst.msk [vmem:[%s274_s3 + $0x60] sm:$0xff] %vm92_vm0, %v88_v62  ;;  %106 = vst.msk [vmem:[%s274_s3 + $0x68] sm:$0xff] %vm92_vm0, %v89_v63 }
  0x12   :  { %107 = vst.msk [vmem:[%s274_s3 + $0x70] sm:$0xff] %vm92_vm0, %v90_v0  ;;  %108 = vst.msk [vmem:[%s274_s3 + $0x78] sm:$0xff] %vm92_vm0, %v91_v1 }

// kernel: _lambda_.46
= control target key start
LH: loop header
LB: loop body
LE: loop exit
PB: predicated region body
PF: predicated region fallthrough
CT: control target
= control target key end

     0   :  { %vm24_vm0 = vcmask 523264   ;;  %vm115_vm1 = vcmask 1040384   ;;  %vm117_vm2 = vcmask 517120   ;;  %s216_s0 = inlined_call_operand.vmem [shape: f32[128,64], index: 0, kind: input, shape index: {}]   ;;  %s217_s1 = inlined_call_operand.vmem [shape: f32[1,2,64], index: 1, kind: output, shape index: {}]  }
   0x1   :  { %v8_v0 = vld [vmem:[%s216_s0] sm:$0xff]  ;;  %v9_v1 = vld [vmem:[%s216_s0 + $0x8] sm:$0xff]  ;;  %v10_v2 = vld [vmem:[%s216_s0 + $0x10] sm:$0xff] }
   0x2   :  { %v25_v3 = vsel %vm24_vm0, %v8_v0, 0.0  ;;  %v26_v4 = vsel %vm24_vm0, %v9_v1, 0.0  ;;  %v28_v5 = vsel %vm24_vm0, %v10_v2, 0.0  ;;  %v11_v6 = vld [vmem:[%s216_s0 + $0x18] sm:$0xff]  ;;  %v12_v9 = vld [vmem:[%s216_s0 + $0x20] sm:$0xff]  ;;  %v13_v12 = vld [vmem:[%s216_s0 + $0x28] sm:$0xff]  ;;  %v62_v14 = vmul.f32 %v8_v0, %v8_v0 }
   0x3   :  { %v27_v7 = vadd.f32 %v26_v4, %v25_v3  ;;  %v30_v8 = vsel %vm24_vm0, %v11_v6, 0.0  ;;  %v32_v11 = vsel %vm24_vm0, %v12_v9, 0.0  ;;  %v63_v15 = vmul.f32 %v9_v1, %v9_v1  ;;  %v14_v18 = vld [vmem:[%s216_s0 + $0x30] sm:$0xff]  ;;  %v15_v23 = vld [vmem:[%s216_s0 + $0x38] sm:$0xff]  ;;  %v16_v30 = vld [vmem:[%s216_s0 + $0x40] sm:$0xff] }
   0x4   :  { %v64_v16 = vmul.f32 %v10_v2, %v10_v2  ;;  %v34_v17 = vsel %vm24_vm0, %v13_v12, 0.0  ;;  %v65_v20 = vmul.f32 %v11_v6, %v11_v6  ;;  %v36_v21 = vsel %vm24_vm0, %v14_v18, 0.0  ;;  %v17_v36 = vld [vmem:[%s216_s0 + $0x48] sm:$0xff]  ;;  %v18_v42 = vld [vmem:[%s216_s0 + $0x50] sm:$0xff]  ;;  %v19_v48 = vld [vmem:[%s216_s0 + $0x58] sm:$0xff] }
   0x5   :  { %v29_v10 = vadd.f32 %v28_v5, %v27_v7  ;;  %v66_v22 = vmul.f32 %v12_v9, %v12_v9  ;;  %v78_v25 = vsel %vm24_vm0, %v62_v14, 0.0  ;;  %v79_v26 = vsel %vm24_vm0, %v63_v15, 0.0  ;;  %v20_v54 = vld [vmem:[%s216_s0 + $0x60] sm:$0xff]  ;;  %v21_v60 = vld [vmem:[%s216_s0 + $0x68] sm:$0xff]  ;;  %v22_v2 = vld [vmem:[%s216_s0 + $0x70] sm:$0xff] }
   0x6   :  { %v81_v27 = vsel %vm24_vm0, %v64_v16, 0.0  ;;  %v38_v28 = vsel %vm24_vm0, %v15_v23, 0.0  ;;  %v80_v29 = vadd.f32 %v79_v26, %v78_v25  ;;  %v67_v32 = vmul.f32 %v13_v12, %v13_v12 }
   0x7   :  { %v31_v13 = vadd.f32 %v30_v8, %v29_v10  ;;  %v83_v33 = vsel %vm24_vm0, %v65_v20, 0.0  ;;  %v40_v34 = vsel %vm24_vm0, %v16_v30, 0.0  ;;  %v68_v38 = vmul.f32 %v14_v18, %v14_v18  ;;  %v23_v8 = vld [vmem:[%s216_s0 + $0x78] sm:$0xff] }
   0x8   :  { %v82_v35 = vadd.f32 %v81_v27, %v80_v29  ;;  %v85_v39 = vsel %vm24_vm0, %v66_v22, 0.0  ;;  %v42_v40 = vsel %vm24_vm0, %v17_v36, 0.0  ;;  %v69_v44 = vmul.f32 %v15_v23, %v15_v23 }
   0x9   :  { %v33_v19 = vadd.f32 %v32_v11, %v31_v13  ;;  %v87_v45 = vsel %vm24_vm0, %v67_v32, 0.0  ;;  %v44_v46 = vsel %vm24_vm0, %v18_v42, 0.0  ;;  %v70_v50 = vmul.f32 %v16_v30, %v16_v30 }
   0xa   :  { %v84_v41 = vadd.f32 %v83_v33, %v82_v35  ;;  %v89_v51 = vsel %vm24_vm0, %v68_v38, 0.0  ;;  %v46_v52 = vsel %vm24_vm0, %v19_v48, 0.0  ;;  %v71_v56 = vmul.f32 %v17_v36, %v17_v36 }
   0xb   :  { %v35_v24 = vadd.f32 %v34_v17, %v33_v19  ;;  %v91_v57 = vsel %vm24_vm0, %v69_v44, 0.0  ;;  %v48_v58 = vsel %vm24_vm0, %v20_v54, 0.0  ;;  %v72_v62 = vmul.f32 %v18_v42, %v18_v42 }
   0xc   :  { %v86_v47 = vadd.f32 %v85_v39, %v84_v41  ;;  %v93_v63 = vsel %vm24_vm0, %v70_v50, 0.0  ;;  %v50_v0 = vsel %vm24_vm0, %v21_v60, 0.0  ;;  %v73_v4 = vmul.f32 %v19_v48, %v19_v48 }
   0xd   :  { %v37_v31 = vadd.f32 %v36_v21, %v35_v24  ;;  %v95_v5 = vsel %vm24_vm0, %v71_v56, 0.0  ;;  %v52_v6 = vsel %vm24_vm0, %v22_v2, 0.0  ;;  %v74_v10 = vmul.f32 %v20_v54, %v20_v54 }
   0xe   :  { %v88_v53 = vadd.f32 %v87_v45, %v86_v47  ;;  %v97_v11 = vsel %vm24_vm0, %v72_v62, 0.0  ;;  %v54_v12 = vsel %vm24_vm0, %v23_v8, 0.0  ;;  %v75_v15 = vmul.f32 %v21_v60, %v21_v60 }
   0xf   :  { %v39_v37 = vadd.f32 %v38_v28, %v37_v31  ;;  %v99_v16 = vsel %vm24_vm0, %v73_v4, 0.0  ;;  %v76_v19 = vmul.f32 %v22_v2, %v22_v2  ;;  %v101_v20 = vsel %vm24_vm0, %v74_v10, 0.0 }
  0x10   :  { %v90_v59 = vadd.f32 %v89_v51, %v88_v53  ;;  %v77_v23 = vmul.f32 %v23_v8, %v23_v8  ;;  %v103_v24 = vsel %vm24_vm0, %v75_v15, 0.0 }
  0x11   :  { %v41_v43 = vadd.f32 %v40_v34, %v39_v37  ;;  %v105_v27 = vsel %vm24_vm0, %v76_v19, 0.0 }
  0x12   :  { %v92_v1 = vadd.f32 %v91_v57, %v90_v59  ;;  %v107_v29 = vsel %vm24_vm0, %v77_v23, 0.0 }
  0x13   :  { %v43_v49 = vadd.f32 %v42_v40, %v41_v43 }
  0x14   :  { %v94_v7 = vadd.f32 %v93_v63, %v92_v1 }
  0x15   :  { %v45_v55 = vadd.f32 %v44_v46, %v43_v49 }
  0x16   :  { %v96_v13 = vadd.f32 %v95_v5, %v94_v7 }
  0x17   :  { %v47_v61 = vadd.f32 %v46_v52, %v45_v55 }
  0x18   :  { %v98_v17 = vadd.f32 %v97_v11, %v96_v13 }
  0x19   :  { %v49_v3 = vadd.f32 %v48_v58, %v47_v61 }
  0x1a   :  { %v100_v21 = vadd.f32 %v99_v16, %v98_v17 }
  0x1b   :  { %v51_v9 = vadd.f32 %v50_v0, %v49_v3 }
  0x1c   :  { %v102_v25 = vadd.f32 %v101_v20, %v100_v21 }
  0x1d   :  { %v53_v14 = vadd.f32 %v52_v6, %v51_v9 }
  0x1e   :  { %v104_v28 = vadd.f32 %v103_v24, %v102_v25 }
  0x1f   :  { %v55_v18 = vadd.f32 %v54_v12, %v53_v14 }
  0x20   :  { %v106_v31 = vadd.f32 %v105_v27, %v104_v28 }
  0x21   :  { %v56_v22 = vrot.slane %v55_v18, 4 }
  0x22   :  { %v108_v32 = vadd.f32 %v107_v29, %v106_v31 }
  0x23   :  { %v57_v26 = vadd.f32 %v56_v22, %v55_v18 }
  0x24   :  { %v109_v34 = vrot.slane %v108_v32, 4 }
  0x25   :  { %v58_v30 = vrot.slane %v57_v26, 2 }
  0x26   :  { %v110_v35 = vadd.f32 %v109_v34, %v108_v32 }
  0x27   :  { %v59_v33 = vadd.f32 %v58_v30, %v57_v26 }
  0x28   :  { %v111_v37 = vrot.slane %v110_v35, 2 }
  0x29   :  { %v60_v36 = vrot.slane %v59_v33, 1 }
  0x2a   :  { %v112_v38 = vadd.f32 %v111_v37, %v110_v35 }
  0x2b   :  { %v61_v39 = vadd.f32 %v60_v36, %v59_v33 }
  0x2c   :  { %v113_v40 = vrot.slane %v112_v38, 1 }
  0x2e   :  { %v114_v41 = vadd.f32 %v113_v40, %v112_v38 }
  0x30   :  { %v116_v42 = vsel %vm115_vm1, %v61_v39, %v114_v41 }
  0x31   :  { %118 = vst.msk [vmem:[%s217_s1] sm:$0x3] %vm117_vm2, %v116_v42 }

// kernel: _lambda_.48
= control target key start
LH: loop header
LB: loop body
LE: loop exit
PB: predicated region body
PF: predicated region fallthrough
CT: control target
= control target key end

     0   :  { %vm12_vm0 = vcmask 523264   ;;  %vm43_vm1 = vcmask 1040384   ;;  %vm45_vm2 = vcmask 517120   ;;  %s84_s0 = inlined_call_operand.vmem [shape: f32[32,64], index: 0, kind: input, shape index: {}]   ;;  %s85_s1 = inlined_call_operand.vmem [shape: f32[1,2,64], index: 1, kind: output, shape index: {}]  }
   0x1   :  { %v8_v0 = vld [vmem:[%s84_s0] sm:$0xff]  ;;  %v9_v1 = vld [vmem:[%s84_s0 + $0x8] sm:$0xff]  ;;  %v10_v2 = vld [vmem:[%s84_s0 + $0x10] sm:$0xff] }
   0x2   :  { %v11_v3 = vld [vmem:[%s84_s0 + $0x18] sm:$0xff]  ;;  %v13_v4 = vsel %vm12_vm0, %v8_v0, 0.0  ;;  %v14_v5 = vsel %vm12_vm0, %v9_v1, 0.0  ;;  %v16_v6 = vsel %vm12_vm0, %v10_v2, 0.0  ;;  %v26_v7 = vmul.f32 %v8_v0, %v8_v0 }
   0x3   :  { %v15_v8 = vadd.f32 %v14_v5, %v13_v4  ;;  %v27_v9 = vmul.f32 %v9_v1, %v9_v1  ;;  %v28_v10 = vmul.f32 %v10_v2, %v10_v2  ;;  %v18_v11 = vsel %vm12_vm0, %v11_v3, 0.0 }
   0x4   :  { %v29_v12 = vmul.f32 %v11_v3, %v11_v3  ;;  %v30_v13 = vsel %vm12_vm0, %v26_v7, 0.0 }
   0x5   :  { %v17_v14 = vadd.f32 %v16_v6, %v15_v8  ;;  %v31_v15 = vsel %vm12_vm0, %v27_v9, 0.0  ;;  %v33_v16 = vsel %vm12_vm0, %v28_v10, 0.0 }
   0x6   :  { %v32_v17 = vadd.f32 %v31_v15, %v30_v13  ;;  %v35_v19 = vsel %vm12_vm0, %v29_v12, 0.0 }
   0x7   :  { %v19_v18 = vadd.f32 %v18_v11, %v17_v14 }
   0x8   :  { %v34_v20 = vadd.f32 %v33_v16, %v32_v17 }
   0x9   :  { %v20_v21 = vrot.slane %v19_v18, 4 }
   0xa   :  { %v36_v22 = vadd.f32 %v35_v19, %v34_v20 }
   0xb   :  { %v21_v23 = vadd.f32 %v20_v21, %v19_v18 }
   0xc   :  { %v37_v24 = vrot.slane %v36_v22, 4 }
   0xd   :  { %v22_v25 = vrot.slane %v21_v23, 2 }
   0xe   :  { %v38_v26 = vadd.f32 %v37_v24, %v36_v22 }
   0xf   :  { %v23_v27 = vadd.f32 %v22_v25, %v21_v23 }
  0x10   :  { %v39_v28 = vrot.slane %v38_v26, 2 }
  0x11   :  { %v24_v29 = vrot.slane %v23_v27, 1 }
  0x12   :  { %v40_v30 = vadd.f32 %v39_v28, %v38_v26 }
  0x13   :  { %v25_v31 = vadd.f32 %v24_v29, %v23_v27 }
  0x14   :  { %v41_v32 = vrot.slane %v40_v30, 1 }
  0x16   :  { %v42_v33 = vadd.f32 %v41_v32, %v40_v30 }
  0x18   :  { %v44_v34 = vsel %vm43_vm1, %v25_v31, %v42_v33 }
  0x19   :  { %46 = vst.msk [vmem:[%s85_s1] sm:$0x3] %vm45_vm2, %v44_v34 }

// kernel: _lambda_.51
= control target key start
LH: loop header
LB: loop body
LE: loop exit
PB: predicated region body
PF: predicated region fallthrough
CT: control target
= control target key end

     0   :  { %vm55_vm0 = vcmask 523264   ;;  %s133_s0 = inlined_call_operand.vmem [shape: f32[32,64], index: 0, kind: input, shape index: {}]   ;;  %s134_s1 = inlined_call_operand.vmem [shape: f32[1,64], index: 1, kind: input, shape index: {}]   ;;  %s135_s2 = inlined_call_operand.vmem [shape: f32[1,64], index: 2, kind: input, shape index: {}]   ;;  %s136_s3 = inlined_call_operand.vmem [shape: f32[32,64], index: 3, kind: input, shape index: {}]   ;;  %s137_s4 = inlined_call_operand.vmem [shape: f32[32,64], index: 4, kind: output, shape index: {}]  }
   0x1   :  { %v17_v0 = vld [vmem:[%s133_s0] sm:$0xff]  ;;  %v18_v4 = vld [vmem:[%s133_s0 + $0x8] sm:$0xff]  ;;  %v19_v7 = vld [vmem:[%s133_s0 + $0x10] sm:$0xff] }
   0x2   :  { %v64_v1 = vld [vmem:[%s134_s1] ss:$0 sm:$0xff]  ;;  %v20_v8 = vld [vmem:[%s133_s0 + $0x18] sm:$0xff]  ;;  %v44_v10 = vld [vmem:[%s136_s3 + $0x8] sm:$0xff] }
   0x3   :  { %v65_v2 = vld [vmem:[%s135_s2] ss:$0 sm:$0xff]  ;;  %v28_v3 = vmul.f32 %v64_v1, %v17_v0  ;;  %v29_v6 = vmul.f32 %v64_v1, %v18_v4  ;;  %v30_v11 = vmul.f32 %v64_v1, %v19_v7  ;;  %v31_v12 = vmul.f32 %v64_v1, %v20_v8  ;;  %v45_v14 = vld [vmem:[%s136_s3 + $0x10] sm:$0xff]  ;;  %v46_v15 = vld [vmem:[%s136_s3 + $0x18] sm:$0xff] }
   0x4   :  { %v43_v5 = vld [vmem:[%s136_s3] sm:$0xff] }
   0x5   :  { %v39_v9 = vadd.f32 %v65_v2, %v28_v3  ;;  %v40_v13 = vadd.f32 %v65_v2, %v29_v6  ;;  %v41_v17 = vadd.f32 %v65_v2, %v30_v11  ;;  %v42_v18 = vadd.f32 %v65_v2, %v31_v12 }
   0x7   :  { %v47_v16 = vadd.f32 %v43_v5, %v39_v9  ;;  %v48_v19 = vadd.f32 %v44_v10, %v40_v13  ;;  %v49_v21 = vadd.f32 %v45_v14, %v41_v17  ;;  %v50_v22 = vadd.f32 %v46_v15, %v42_v18 }
   0x9   :  { %v51_v20 = vmax.f32 %v47_v16, 0.0  ;;  %v52_v23 = vmax.f32 %v48_v19, 0.0  ;;  %v53_v24 = vmax.f32 %v49_v21, 0.0  ;;  %v54_v25 = vmax.f32 %v50_v22, 0.0 }
   0xb   :  { %56 = vst.msk [vmem:[%s137_s4] sm:$0xff] %vm55_vm0, %v51_v20  ;;  %57 = vst.msk [vmem:[%s137_s4 + $0x8] sm:$0xff] %vm55_vm0, %v52_v23 }
   0xc   :  { %58 = vst.msk [vmem:[%s137_s4 + $0x10] sm:$0xff] %vm55_vm0, %v53_v24  ;;  %59 = vst.msk [vmem:[%s137_s4 + $0x18] sm:$0xff] %vm55_vm0, %v54_v25 }

// kernel: _lambda_.49
= control target key start
LH: loop header
LB: loop body
LE: loop exit
PB: predicated region body
PF: predicated region fallthrough
CT: control target
= control target key end

     0   :  { %vm44_vm0 = vcmask 523264   ;;  %s105_s0 = inlined_call_operand.vmem [shape: f32[32,64], index: 0, kind: input, shape index: {}]   ;;  %s106_s1 = inlined_call_operand.vmem [shape: f32[1,64], index: 1, kind: input, shape index: {}]   ;;  %s107_s2 = inlined_call_operand.vmem [shape: f32[1,64], index: 2, kind: input, shape index: {}]   ;;  %s108_s3 = inlined_call_operand.vmem [shape: f32[32,64], index: 3, kind: output, shape index: {}]  }
   0x1   :  { %v14_v0 = vld [vmem:[%s105_s0] sm:$0xff]  ;;  %v15_v4 = vld [vmem:[%s105_s0 + $0x8] sm:$0xff]  ;;  %v16_v5 = vld [vmem:[%s105_s0 + $0x10] sm:$0xff] }
   0x2   :  { %v53_v1 = vld [vmem:[%s106_s1] ss:$0 sm:$0xff]  ;;  %v17_v6 = vld [vmem:[%s105_s0 + $0x18] sm:$0xff] }
   0x3   :  { %v54_v2 = vld [vmem:[%s107_s2] ss:$0 sm:$0xff]  ;;  %v25_v3 = vmul.f32 %v53_v1, %v14_v0  ;;  %v26_v7 = vmul.f32 %v53_v1, %v15_v4  ;;  %v27_v8 = vmul.f32 %v53_v1, %v16_v5  ;;  %v28_v9 = vmul.f32 %v53_v1, %v17_v6 }
   0x5   :  { %v36_v10 = vadd.f32 %v54_v2, %v25_v3  ;;  %v37_v11 = vadd.f32 %v54_v2, %v26_v7  ;;  %v38_v12 = vadd.f32 %v54_v2, %v27_v8  ;;  %v39_v13 = vadd.f32 %v54_v2, %v28_v9 }
   0x7   :  { %v40_v14 = vmax.f32 %v36_v10, 0.0  ;;  %v41_v15 = vmax.f32 %v37_v11, 0.0  ;;  %v42_v16 = vmax.f32 %v38_v12, 0.0  ;;  %v43_v17 = vmax.f32 %v39_v13, 0.0 }
   0x9   :  { %45 = vst.msk [vmem:[%s108_s3] sm:$0xff] %vm44_vm0, %v40_v14  ;;  %46 = vst.msk [vmem:[%s108_s3 + $0x8] sm:$0xff] %vm44_vm0, %v41_v15 }
   0xa   :  { %47 = vst.msk [vmem:[%s108_s3 + $0x10] sm:$0xff] %vm44_vm0, %v42_v16  ;;  %48 = vst.msk [vmem:[%s108_s3 + $0x18] sm:$0xff] %vm44_vm0, %v43_v17 }

// kernel: _lambda_.58
= control target key start
LH: loop header
LB: loop body
LE: loop exit
PB: predicated region body
PF: predicated region fallthrough
CT: control target
= control target key end

     0   :  { %vm22_vm0 = vcmask 1040384   ;;  %s45_s0 = inlined_call_operand.vmem [shape: f32[8,128], index: 0, kind: input, shape index: {}]   ;;  %s46_s1 = inlined_call_operand.vmem [shape: f32[1,2,128], index: 1, kind: output, shape index: {}]  }
   0x1   :  { %v8_v0 = vld [vmem:[%s45_s0] sm:$0xff] }
   0x2   :  { %v9_v1 = vrot.slane %v8_v0, 4  ;;  %v15_v2 = vmul.f32 %v8_v0, %v8_v0 }
   0x4   :  { %v10_v3 = vadd.f32 %v9_v1, %v8_v0  ;;  %v16_v4 = vrot.slane %v15_v2, 4 }
   0x6   :  { %v11_v5 = vrot.slane %v10_v3, 2  ;;  %v17_v6 = vadd.f32 %v16_v4, %v15_v2 }
   0x8   :  { %v12_v7 = vadd.f32 %v11_v5, %v10_v3  ;;  %v18_v8 = vrot.slane %v17_v6, 2 }
   0xa   :  { %v13_v9 = vrot.slane %v12_v7, 1  ;;  %v19_v10 = vadd.f32 %v18_v8, %v17_v6 }
   0xc   :  { %v14_v11 = vadd.f32 %v13_v9, %v12_v7  ;;  %v20_v12 = vrot.slane %v19_v10, 1 }
   0xe   :  { %v21_v13 = vadd.f32 %v20_v12, %v19_v10 }
  0x10   :  { %v23_v14 = vsel %vm22_vm0, %v14_v11, %v21_v13 }
  0x11   :  { %24 = vst [vmem:[%s46_s1] sm:$0x3] %v23_v14 }

// kernel: _lambda_.59
= control target key start
LH: loop header
LB: loop body
LE: loop exit
PB: predicated region body
PF: predicated region fallthrough
CT: control target
= control target key end

     0   :  { %s70_s0 = inlined_call_operand.vmem [shape: f32[8,128], index: 0, kind: input, shape index: {}]   ;;  %s71_s1 = inlined_call_operand.vmem [shape: f32[1,128], index: 1, kind: input, shape index: {}]   ;;  %s72_s2 = inlined_call_operand.vmem [shape: f32[1,128], index: 2, kind: input, shape index: {}]   ;;  %s73_s3 = inlined_call_operand.vmem [shape: f32[8,128], index: 3, kind: output, shape index: {}]  }
   0x1   :  { %v14_v0 = vld [vmem:[%s70_s0] sm:$0xff] }
   0x2   :  { %v36_v1 = vld [vmem:[%s71_s1] ss:$0 sm:$0xff] }
   0x3   :  { %v37_v2 = vld [vmem:[%s72_s2] ss:$0 sm:$0xff]  ;;  %v22_v3 = vmul.f32 %v36_v1, %v14_v0 }
   0x5   :  { %v30_v4 = vadd.f32 %v37_v2, %v22_v3 }
   0x7   :  { %31 = vst [vmem:[%s73_s3] sm:$0xff] %v30_v4 }

// kernel: _lambda_.61
= control target key start
LH: loop header
LB: loop body
LE: loop exit
PB: predicated region body
PF: predicated region fallthrough
CT: control target
= control target key end

     0   :  { %s84_s0 = inlined_call_operand.vmem [shape: f32[8,128], index: 0, kind: input, shape index: {}]   ;;  %s85_s1 = inlined_call_operand.vmem [shape: f32[1,128], index: 1, kind: input, shape index: {}]   ;;  %s86_s2 = inlined_call_operand.vmem [shape: f32[1,128], index: 2, kind: input, shape index: {}]   ;;  %s87_s3 = inlined_call_operand.vmem [shape: f32[8,128], index: 3, kind: input, shape index: {}]   ;;  %s88_s4 = inlined_call_operand.vmem [shape: f32[8,128], index: 4, kind: output, shape index: {}]  }
   0x1   :  { %v17_v0 = vld [vmem:[%s84_s0] sm:$0xff] }
   0x2   :  { %v42_v1 = vld [vmem:[%s85_s1] ss:$0 sm:$0xff] }
   0x3   :  { %v43_v2 = vld [vmem:[%s86_s2] ss:$0 sm:$0xff]  ;;  %v25_v3 = vmul.f32 %v42_v1, %v17_v0 }
   0x4   :  { %v34_v4 = vld [vmem:[%s87_s3] sm:$0xff] }
   0x5   :  { %v33_v5 = vadd.f32 %v43_v2, %v25_v3 }
   0x7   :  { %v35_v6 = vadd.f32 %v34_v4, %v33_v5 }
   0x9   :  { %v36_v7 = vmax.f32 %v35_v6, 0.0 }
   0xb   :  { %37 = vst [vmem:[%s88_s4] sm:$0xff] %v36_v7 }

// kernel: _lambda_.68
= control target key start
LH: loop header
LB: loop body
LE: loop exit
PB: predicated region body
PF: predicated region fallthrough
CT: control target
= control target key end

     0   :  { %v13_v0 = vlaneseq  ;;  %v82_v2 = vmov 1983009808   ;;  %vm20_vm0 = vcmask 1041408   ;;  %vm61_vm1 = vcmask 1040384   ;;  %s99_s0 = inlined_call_operand.vmem [shape: f32[2,256], index: 0, kind: input, shape index: {}]   ;;  %s100_s1 = inlined_call_operand.vmem [shape: f32[1,2,256], index: 1, kind: output, shape index: {}]  }
   0x1   :  { %v8_v1 = vld [vmem:[%s99_s0] sm:$0xf]  ;;  %v11_v3 = vunpack.c.l.s4 %v82_v2 }
   0x2   :  { %v14_v4 = vshrl.u32 %v13_v0, 7  ;;  %v35_v6 = vmul.f32 %v8_v1, %v8_v1 }
   0x3   :  { %v12_v5 = vunpack.c.0.s8 %v11_v3 }
   0x5   :  { %v15_v7 = vsub.s32 %v12_v5, %v14_v4 }
   0x7   :  { %v16_v8 = vrot.slane %v8_v1, %v15_v7  ;;  %v43_v9 = vrot.slane %v35_v6, %v15_v7 }
   0x9   :  { %v17_v10 = vcombine.high %v16_v8, %v16_v8  ;;  %v21_v11 = vsel %vm20_vm0, %v16_v8, 0.0  ;;  %v44_v12 = vcombine.high %v43_v9, %v43_v9  ;;  %v47_v13 = vsel %vm20_vm0, %v43_v9, 0.0 }
   0xa   :  { %v22_v14 = vrot.slane %v21_v11, 4  ;;  %v48_v15 = vrot.slane %v47_v13, 4 }
   0xb   :  { %v28_v16 = vsel %vm20_vm0, %v17_v10, 0.0  ;;  %v54_v17 = vsel %vm20_vm0, %v44_v12, 0.0 }
   0xc   :  { %v23_v18 = vadd.f32 %v22_v14, %v21_v11  ;;  %v29_v19 = vrot.slane %v28_v16, 4  ;;  %v49_v20 = vadd.f32 %v48_v15, %v47_v13  ;;  %v55_v21 = vrot.slane %v54_v17, 4 }
   0xe   :  { %v24_v22 = vrot.slane %v23_v18, 2  ;;  %v30_v23 = vadd.f32 %v29_v19, %v28_v16  ;;  %v50_v24 = vrot.slane %v49_v20, 2  ;;  %v56_v25 = vadd.f32 %v55_v21, %v54_v17 }
  0x10   :  { %v25_v26 = vadd.f32 %v24_v22, %v23_v18  ;;  %v31_v27 = vrot.slane %v30_v23, 2  ;;  %v51_v28 = vadd.f32 %v50_v24, %v49_v20  ;;  %v57_v29 = vrot.slane %v56_v25, 2 }
  0x12   :  { %v26_v30 = vrot.slane %v25_v26, 1  ;;  %v32_v31 = vadd.f32 %v31_v27, %v30_v23  ;;  %v52_v32 = vrot.slane %v51_v28, 1  ;;  %v58_v33 = vadd.f32 %v57_v29, %v56_v25 }
  0x14   :  { %v27_v34 = vadd.f32 %v26_v30, %v25_v26  ;;  %v33_v35 = vrot.slane %v32_v31, 1  ;;  %v53_v36 = vadd.f32 %v52_v32, %v51_v28  ;;  %v59_v37 = vrot.slane %v58_v33, 1 }
  0x16   :  { %v34_v38 = vadd.f32 %v33_v35, %v32_v31  ;;  %v60_v39 = vadd.f32 %v59_v37, %v58_v33  ;;  %v62_v40 = vsel %vm61_vm1, %v27_v34, %v53_v36 }
  0x18   :  { %v63_v41 = vsel %vm61_vm1, %v34_v38, %v60_v39 }
  0x19   :  { %v66_v42 = vcombine.low %v62_v40, %v63_v41 }
  0x1b   :  { %80 = vst.sshfl [vmem:[%s100_s1] sm:$0x33 pattern:$0x76325410] %v66_v42 }

// kernel: _lambda_.57
= control target key start
LH: loop header
LB: loop body
LE: loop exit
PB: predicated region body
PF: predicated region fallthrough
CT: control target
= control target key end

     0   :  { %s71_s0 = inlined_call_operand.vmem [shape: f32[8,128], index: 0, kind: input, shape index: {}]   ;;  %s72_s1 = inlined_call_operand.vmem [shape: f32[1,128], index: 1, kind: input, shape index: {}]   ;;  %s73_s2 = inlined_call_operand.vmem [shape: f32[1,128], index: 2, kind: input, shape index: {}]   ;;  %s74_s3 = inlined_call_operand.vmem [shape: f32[8,128], index: 3, kind: output, shape index: {}]  }
   0x1   :  { %v14_v0 = vld [vmem:[%s71_s0] sm:$0xff] }
   0x2   :  { %v37_v1 = vld [vmem:[%s72_s1] ss:$0 sm:$0xff] }
   0x3   :  { %v38_v2 = vld [vmem:[%s73_s2] ss:$0 sm:$0xff]  ;;  %v22_v3 = vmul.f32 %v37_v1, %v14_v0 }
   0x5   :  { %v30_v4 = vadd.f32 %v38_v2, %v22_v3 }
   0x7   :  { %v31_v5 = vmax.f32 %v30_v4, 0.0 }
   0x9   :  { %32 = vst [vmem:[%s74_s3] sm:$0xff] %v31_v5 }

// kernel: _lambda_.67
= control target key start
LH: loop header
LB: loop body
LE: loop exit
PB: predicated region body
PF: predicated region fallthrough
CT: control target
= control target key end

     0   :  { %v17_v0 = vlaneseq  ;;  %v62_v1 = vmov 1983009808   ;;  %s95_s1 = inlined_call_operand.vmem [shape: f32[1,256], index: 1, kind: input, shape index: {}]   ;;  %s96_s2 = inlined_call_operand.vmem [shape: f32[1,256], index: 2, kind: input, shape index: {}]   ;;  %s97_s0 = inlined_call_operand.vmem [shape: f32[2,256], index: 0, kind: input, shape index: {}]   ;;  %s98_s3 = inlined_call_operand.vmem [shape: f32[2,256], index: 3, kind: output, shape index: {}]  }
   0x1   :  { %v27_v2 = vunpack.c.l.s4 %v62_v1  ;;  %v15_v4 = vld [vmem:[%s95_s1] sm:$0x3] }
   0x2   :  { %v18_v3 = vshrl.u32 %v17_v0, 7  ;;  %v35_v6 = vld [vmem:[%s96_s2] sm:$0x3] }
   0x3   :  { %v28_v5 = vunpack.c.0.s8 %v27_v2  ;;  %v14_v16 = vld [vmem:[%s97_s0] sm:$0xf] }
   0x4   :  { %v19_v7 = vsub.s32 0, %v18_v3  ;;  %v23_v8 = vsub.s32 1, %v18_v3 }
   0x5   :  { %v31_v9 = vsub.s32 %v28_v5, %v18_v3 }
   0x6   :  { %v20_v10 = vrot.slane %v15_v4, %v19_v7  ;;  %v24_v11 = vrot.slane %v15_v4, %v23_v8  ;;  %v40_v12 = vrot.slane %v35_v6, %v19_v7  ;;  %v44_v13 = vrot.slane %v35_v6, %v23_v8 }
   0x8   :  { %v25_v14 = vcombine.low %v20_v10, %v24_v11  ;;  %v45_v15 = vcombine.low %v40_v12, %v44_v13 }
   0xa   :  { %v32_v17 = vrot.slane %v25_v14, %v31_v9  ;;  %v52_v18 = vrot.slane %v45_v15, %v31_v9 }
   0xc   :  { %v34_v19 = vmul.f32 %v32_v17, %v14_v16 }
   0xe   :  { %v54_v20 = vadd.f32 %v52_v18, %v34_v19 }
  0x10   :  { %v55_v21 = vmax.f32 %v54_v20, 0.0 }
  0x12   :  { %56 = vst [vmem:[%s98_s3] sm:$0xf] %v55_v21 }

// kernel: _lambda_.69
= control target key start
LH: loop header
LB: loop body
LE: loop exit
PB: predicated region body
PF: predicated region fallthrough
CT: control target
= control target key end

     0   :  { %v17_v0 = vlaneseq  ;;  %v61_v1 = vmov 1983009808   ;;  %s94_s1 = inlined_call_operand.vmem [shape: f32[1,256], index: 1, kind: input, shape index: {}]   ;;  %s95_s2 = inlined_call_operand.vmem [shape: f32[1,256], index: 2, kind: input, shape index: {}]   ;;  %s96_s0 = inlined_call_operand.vmem [shape: f32[2,256], index: 0, kind: input, shape index: {}]   ;;  %s97_s3 = inlined_call_operand.vmem [shape: f32[2,256], index: 3, kind: output, shape index: {}]  }
   0x1   :  { %v27_v2 = vunpack.c.l.s4 %v61_v1  ;;  %v15_v4 = vld [vmem:[%s94_s1] sm:$0x3] }
   0x2   :  { %v18_v3 = vshrl.u32 %v17_v0, 7  ;;  %v35_v6 = vld [vmem:[%s95_s2] sm:$0x3] }
   0x3   :  { %v28_v5 = vunpack.c.0.s8 %v27_v2  ;;  %v14_v16 = vld [vmem:[%s96_s0] sm:$0xf] }
   0x4   :  { %v19_v7 = vsub.s32 0, %v18_v3  ;;  %v23_v8 = vsub.s32 1, %v18_v3 }
   0x5   :  { %v31_v9 = vsub.s32 %v28_v5, %v18_v3 }
   0x6   :  { %v20_v10 = vrot.slane %v15_v4, %v19_v7  ;;  %v24_v11 = vrot.slane %v15_v4, %v23_v8  ;;  %v40_v12 = vrot.slane %v35_v6, %v19_v7  ;;  %v44_v13 = vrot.slane %v35_v6, %v23_v8 }
   0x8   :  { %v25_v14 = vcombine.low %v20_v10, %v24_v11  ;;  %v45_v15 = vcombine.low %v40_v12, %v44_v13 }
   0xa   :  { %v32_v17 = vrot.slane %v25_v14, %v31_v9  ;;  %v52_v18 = vrot.slane %v45_v15, %v31_v9 }
   0xc   :  { %v34_v19 = vmul.f32 %v32_v17, %v14_v16 }
   0xe   :  { %v54_v20 = vadd.f32 %v52_v18, %v34_v19 }
  0x10   :  { %55 = vst [vmem:[%s97_s3] sm:$0xf] %v54_v20 }

// kernel: _lambda_.78
= control target key start
LH: loop header
LB: loop body
LE: loop exit
PB: predicated region body
PF: predicated region fallthrough
CT: control target
= control target key end

     0   :  { %v14_v0 = vlaneseq  ;;  %v145_v2 = vmov 1983009808   ;;  %vm31_vm0 = vcmask 1041408   ;;  %vm111_vm1 = vcmask 1040384   ;;  %s178_s0 = inlined_call_operand.vmem [shape: f32[2,512], index: 0, kind: input, shape index: {}]   ;;  %s179_s1 = inlined_call_operand.vmem [shape: f32[1,2,512], index: 1, kind: output, shape index: {}]  }
   0x1   :  { %v8_v1 = vld [vmem:[%s178_s0] sm:$0xff]  ;;  %v12_v3 = vunpack.c.l.s4 %v145_v2 }
   0x2   :  { %v15_v4 = vshrl.u32 %v14_v0, 7  ;;  %v60_v5 = vmul.f32 %v8_v1, %v8_v1  ;;  %v10_v6 = vcombine.high %v8_v1, %v8_v1 }
   0x3   :  { %v13_v7 = vunpack.c.0.s8 %v12_v3 }
   0x4   :  { %v62_v8 = vcombine.high %v60_v5, %v60_v5 }
   0x5   :  { %v159_v9 = vsub.s32 %v13_v7, %v15_v4 }
   0x7   :  { %v17_v10 = vrot.slane %v8_v1, %v159_v9  ;;  %v24_v11 = vrot.slane %v10_v6, %v159_v9  ;;  %v69_v12 = vrot.slane %v60_v5, %v159_v9  ;;  %v76_v13 = vrot.slane %v62_v8, %v159_v9 }
   0x9   :  { %v25_v14 = vcombine.high %v17_v10, %v17_v10  ;;  %v26_v15 = vcombine.high %v24_v11, %v24_v11  ;;  %v32_v16 = vsel %vm31_vm0, %v17_v10, 0.0  ;;  %v46_v17 = vsel %vm31_vm0, %v24_v11, 0.0 }
   0xa   :  { %v33_v18 = vrot.slane %v32_v16, 4  ;;  %v47_v19 = vrot.slane %v46_v17, 4  ;;  %v77_v20 = vcombine.high %v69_v12, %v69_v12  ;;  %v78_v21 = vcombine.high %v76_v13, %v76_v13 }
   0xb   :  { %v39_v22 = vsel %vm31_vm0, %v25_v14, 0.0  ;;  %v53_v23 = vsel %vm31_vm0, %v26_v15, 0.0  ;;  %v83_v24 = vsel %vm31_vm0, %v69_v12, 0.0  ;;  %v97_v25 = vsel %vm31_vm0, %v76_v13, 0.0 }
   0xc   :  { %v34_v26 = vadd.f32 %v33_v18, %v32_v16  ;;  %v40_v27 = vrot.slane %v39_v22, 4  ;;  %v48_v28 = vadd.f32 %v47_v19, %v46_v17  ;;  %v54_v29 = vrot.slane %v53_v23, 4 }
   0xd   :  { %v84_v30 = vrot.slane %v83_v24, 4  ;;  %v90_v31 = vsel %vm31_vm0, %v77_v20, 0.0  ;;  %v98_v32 = vrot.slane %v97_v25, 4  ;;  %v104_v33 = vsel %vm31_vm0, %v78_v21, 0.0 }
   0xe   :  { %v35_v34 = vrot.slane %v34_v26, 2  ;;  %v41_v35 = vadd.f32 %v40_v27, %v39_v22  ;;  %v49_v36 = vrot.slane %v48_v28, 2  ;;  %v55_v37 = vadd.f32 %v54_v29, %v53_v23 }
   0xf   :  { %v85_v38 = vadd.f32 %v84_v30, %v83_v24  ;;  %v91_v39 = vrot.slane %v90_v31, 4  ;;  %v99_v40 = vadd.f32 %v98_v32, %v97_v25  ;;  %v105_v41 = vrot.slane %v104_v33, 4 }
  0x10   :  { %v36_v42 = vadd.f32 %v35_v34, %v34_v26  ;;  %v42_v43 = vrot.slane %v41_v35, 2  ;;  %v50_v44 = vadd.f32 %v49_v36, %v48_v28  ;;  %v56_v45 = vrot.slane %v55_v37, 2 }
  0x11   :  { %v86_v46 = vrot.slane %v85_v38, 2  ;;  %v92_v47 = vadd.f32 %v91_v39, %v90_v31  ;;  %v100_v48 = vrot.slane %v99_v40, 2  ;;  %v106_v49 = vadd.f32 %v105_v41, %v104_v33 }
  0x12   :  { %v37_v50 = vrot.slane %v36_v42, 1  ;;  %v43_v51 = vadd.f32 %v42_v43, %v41_v35  ;;  %v51_v52 = vrot.slane %v50_v44, 1  ;;  %v57_v53 = vadd.f32 %v56_v45, %v55_v37 }
  0x13   :  { %v87_v54 = vadd.f32 %v86_v46, %v85_v38  ;;  %v93_v55 = vrot.slane %v92_v47, 2  ;;  %v101_v56 = vadd.f32 %v100_v48, %v99_v40  ;;  %v107_v57 = vrot.slane %v106_v49, 2 }
  0x14   :  { %v38_v58 = vadd.f32 %v37_v50, %v36_v42  ;;  %v44_v59 = vrot.slane %v43_v51, 1  ;;  %v52_v60 = vadd.f32 %v51_v52, %v50_v44  ;;  %v58_v61 = vrot.slane %v57_v53, 1 }
  0x15   :  { %v88_v62 = vrot.slane %v87_v54, 1  ;;  %v94_v63 = vadd.f32 %v93_v55, %v92_v47  ;;  %v102_v0 = vrot.slane %v101_v56, 1  ;;  %v108_v1 = vadd.f32 %v107_v57, %v106_v49 }
  0x16   :  { %v45_v2 = vadd.f32 %v44_v59, %v43_v51  ;;  %v59_v3 = vadd.f32 %v58_v61, %v57_v53 }
  0x17   :  { %v89_v4 = vadd.f32 %v88_v62, %v87_v54  ;;  %v95_v5 = vrot.slane %v94_v63, 1  ;;  %v103_v6 = vadd.f32 %v102_v0, %v101_v56  ;;  %v109_v7 = vrot.slane %v108_v1, 1 }
  0x19   :  { %v96_v8 = vadd.f32 %v95_v5, %v94_v63  ;;  %v110_v10 = vadd.f32 %v109_v7, %v108_v1  ;;  %v112_v11 = vsel %vm111_vm1, %v38_v58, %v89_v4  ;;  %v114_v12 = vsel %vm111_vm1, %v52_v60, %v103_v6 }
  0x1b   :  { %v113_v13 = vsel %vm111_vm1, %v45_v2, %v96_v8  ;;  %v115_v14 = vsel %vm111_vm1, %v59_v3, %v110_v10 }
  0x1c   :  { %v120_v15 = vcombine.low %v112_v11, %v113_v13  ;;  %v121_v16 = vcombine.low %v114_v12, %v115_v14 }
  0x1e   :  { %v128_v17 = vrot.slane %v120_v15, %v159_v9  ;;  %v135_v18 = vrot.slane %v121_v16, %v159_v9 }
  0x20   :  { %v136_v19 = vcombine.low %v128_v17, %v135_v18 }
  0x22   :  { %138 = vst [vmem:[%s179_s1] sm:$0xff] %v136_v19 }

// kernel: _lambda_.79
= control target key start
LH: loop header
LB: loop body
LE: loop exit
PB: predicated region body
PF: predicated region fallthrough
CT: control target
= control target key end

     0   :  { %v17_v0 = vlaneseq  ;;  %v95_v1 = vmov 1983009808   ;;  %s128_s1 = inlined_call_operand.vmem [shape: f32[1,512], index: 1, kind: input, shape index: {}]   ;;  %s129_s2 = inlined_call_operand.vmem [shape: f32[1,512], index: 2, kind: input, shape index: {}]   ;;  %s130_s0 = inlined_call_operand.vmem [shape: f32[2,512], index: 0, kind: input, shape index: {}]   ;;  %s131_s3 = inlined_call_operand.vmem [shape: f32[2,512], index: 3, kind: output, shape index: {}]  }
   0x1   :  { %v36_v2 = vunpack.c.l.s4 %v95_v1  ;;  %v15_v4 = vld [vmem:[%s128_s1] sm:$0xf] }
   0x2   :  { %v18_v3 = vshrl.u32 %v17_v0, 7  ;;  %v52_v10 = vld [vmem:[%s129_s2] sm:$0xf] }
   0x3   :  { %v37_v5 = vunpack.c.0.s8 %v36_v2  ;;  %v14_v26 = vld [vmem:[%s130_s0] sm:$0xff] }
   0x4   :  { %v19_v6 = vsub.s32 0, %v18_v3  ;;  %v23_v7 = vsub.s32 1, %v18_v3  ;;  %v27_v8 = vsub.s32 2, %v18_v3  ;;  %v31_v9 = vsub.s32 3, %v18_v3 }
   0x5   :  { %v40_v11 = vsub.s32 %v37_v5, %v18_v3 }
   0x6   :  { %v20_v12 = vrot.slane %v15_v4, %v19_v6  ;;  %v24_v13 = vrot.slane %v15_v4, %v23_v7  ;;  %v28_v14 = vrot.slane %v15_v4, %v27_v8  ;;  %v32_v15 = vrot.slane %v15_v4, %v31_v9 }
   0x7   :  { %v57_v16 = vrot.slane %v52_v10, %v19_v6  ;;  %v61_v17 = vrot.slane %v52_v10, %v23_v7  ;;  %v65_v18 = vrot.slane %v52_v10, %v27_v8  ;;  %v69_v19 = vrot.slane %v52_v10, %v31_v9 }
   0x8   :  { %v33_v20 = vcombine.low %v20_v12, %v24_v13  ;;  %v34_v21 = vcombine.low %v28_v14, %v32_v15 }
   0x9   :  { %v70_v22 = vcombine.low %v57_v16, %v61_v17  ;;  %v71_v23 = vcombine.low %v65_v18, %v69_v19 }
   0xa   :  { %v41_v24 = vrot.slane %v33_v20, %v40_v11  ;;  %v48_v25 = vrot.slane %v34_v21, %v40_v11 }
   0xb   :  { %v78_v27 = vrot.slane %v70_v22, %v40_v11  ;;  %v85_v28 = vrot.slane %v71_v23, %v40_v11 }
   0xc   :  { %v49_v29 = vcombine.low %v41_v24, %v48_v25 }
   0xd   :  { %v86_v30 = vcombine.low %v78_v27, %v85_v28 }
   0xe   :  { %v51_v31 = vmul.f32 %v49_v29, %v14_v26 }
  0x10   :  { %v88_v32 = vadd.f32 %v86_v30, %v51_v31 }
  0x12   :  { %89 = vst [vmem:[%s131_s3] sm:$0xff] %v88_v32 }

// kernel: _lambda_.71
= control target key start
LH: loop header
LB: loop body
LE: loop exit
PB: predicated region body
PF: predicated region fallthrough
CT: control target
= control target key end

     0   :  { %v20_v0 = vlaneseq  ;;  %v67_v1 = vmov 1983009808   ;;  %s108_s1 = inlined_call_operand.vmem [shape: f32[1,256], index: 1, kind: input, shape index: {}]   ;;  %s109_s2 = inlined_call_operand.vmem [shape: f32[1,256], index: 2, kind: input, shape index: {}]   ;;  %s110_s0 = inlined_call_operand.vmem [shape: f32[2,256], index: 0, kind: input, shape index: {}]   ;;  %s111_s3 = inlined_call_operand.vmem [shape: f32[2,256], index: 3, kind: input, shape index: {}]   ;;  %s112_s4 = inlined_call_operand.vmem [shape: f32[2,256], index: 4, kind: output, shape index: {}]  }
   0x1   :  { %v30_v2 = vunpack.c.l.s4 %v67_v1  ;;  %v18_v4 = vld [vmem:[%s108_s1] sm:$0x3] }
   0x2   :  { %v21_v3 = vshrl.u32 %v20_v0, 7  ;;  %v38_v6 = vld [vmem:[%s109_s2] sm:$0x3] }
   0x3   :  { %v31_v5 = vunpack.c.0.s8 %v30_v2  ;;  %v17_v16 = vld [vmem:[%s110_s0] sm:$0xf] }
   0x4   :  { %v22_v7 = vsub.s32 0, %v21_v3  ;;  %v26_v8 = vsub.s32 1, %v21_v3  ;;  %v58_v20 = vld [vmem:[%s111_s3] sm:$0xf] }
   0x5   :  { %v34_v9 = vsub.s32 %v31_v5, %v21_v3 }
   0x6   :  { %v23_v10 = vrot.slane %v18_v4, %v22_v7  ;;  %v27_v11 = vrot.slane %v18_v4, %v26_v8  ;;  %v43_v12 = vrot.slane %v38_v6, %v22_v7  ;;  %v47_v13 = vrot.slane %v38_v6, %v26_v8 }
   0x8   :  { %v28_v14 = vcombine.low %v23_v10, %v27_v11  ;;  %v48_v15 = vcombine.low %v43_v12, %v47_v13 }
   0xa   :  { %v35_v17 = vrot.slane %v28_v14, %v34_v9  ;;  %v55_v18 = vrot.slane %v48_v15, %v34_v9 }
   0xc   :  { %v37_v19 = vmul.f32 %v35_v17, %v17_v16 }
   0xe   :  { %v57_v21 = vadd.f32 %v55_v18, %v37_v19 }
  0x10   :  { %v59_v22 = vadd.f32 %v58_v20, %v57_v21 }
  0x12   :  { %v60_v23 = vmax.f32 %v59_v22, 0.0 }
  0x14   :  { %61 = vst [vmem:[%s112_s4] sm:$0xf] %v60_v23 }

// kernel: _lambda_.77
= control target key start
LH: loop header
LB: loop body
LE: loop exit
PB: predicated region body
PF: predicated region fallthrough
CT: control target
= control target key end

     0   :  { %v17_v0 = vlaneseq  ;;  %v96_v1 = vmov 1983009808   ;;  %s129_s1 = inlined_call_operand.vmem [shape: f32[1,512], index: 1, kind: input, shape index: {}]   ;;  %s130_s2 = inlined_call_operand.vmem [shape: f32[1,512], index: 2, kind: input, shape index: {}]   ;;  %s131_s0 = inlined_call_operand.vmem [shape: f32[2,512], index: 0, kind: input, shape index: {}]   ;;  %s132_s3 = inlined_call_operand.vmem [shape: f32[2,512], index: 3, kind: output, shape index: {}]  }
   0x1   :  { %v36_v2 = vunpack.c.l.s4 %v96_v1  ;;  %v15_v4 = vld [vmem:[%s129_s1] sm:$0xf] }
   0x2   :  { %v18_v3 = vshrl.u32 %v17_v0, 7  ;;  %v52_v10 = vld [vmem:[%s130_s2] sm:$0xf] }
   0x3   :  { %v37_v5 = vunpack.c.0.s8 %v36_v2  ;;  %v14_v26 = vld [vmem:[%s131_s0] sm:$0xff] }
   0x4   :  { %v19_v6 = vsub.s32 0, %v18_v3  ;;  %v23_v7 = vsub.s32 1, %v18_v3  ;;  %v27_v8 = vsub.s32 2, %v18_v3  ;;  %v31_v9 = vsub.s32 3, %v18_v3 }
   0x5   :  { %v40_v11 = vsub.s32 %v37_v5, %v18_v3 }
   0x6   :  { %v20_v12 = vrot.slane %v15_v4, %v19_v6  ;;  %v24_v13 = vrot.slane %v15_v4, %v23_v7  ;;  %v28_v14 = vrot.slane %v15_v4, %v27_v8  ;;  %v32_v15 = vrot.slane %v15_v4, %v31_v9 }
   0x7   :  { %v57_v16 = vrot.slane %v52_v10, %v19_v6  ;;  %v61_v17 = vrot.slane %v52_v10, %v23_v7  ;;  %v65_v18 = vrot.slane %v52_v10, %v27_v8  ;;  %v69_v19 = vrot.slane %v52_v10, %v31_v9 }
   0x8   :  { %v33_v20 = vcombine.low %v20_v12, %v24_v13  ;;  %v34_v21 = vcombine.low %v28_v14, %v32_v15 }
   0x9   :  { %v70_v22 = vcombine.low %v57_v16, %v61_v17  ;;  %v71_v23 = vcombine.low %v65_v18, %v69_v19 }
   0xa   :  { %v41_v24 = vrot.slane %v33_v20, %v40_v11  ;;  %v48_v25 = vrot.slane %v34_v21, %v40_v11 }
   0xb   :  { %v78_v27 = vrot.slane %v70_v22, %v40_v11  ;;  %v85_v28 = vrot.slane %v71_v23, %v40_v11 }
   0xc   :  { %v49_v29 = vcombine.low %v41_v24, %v48_v25 }
   0xd   :  { %v86_v30 = vcombine.low %v78_v27, %v85_v28 }
   0xe   :  { %v51_v31 = vmul.f32 %v49_v29, %v14_v26 }
  0x10   :  { %v88_v32 = vadd.f32 %v86_v30, %v51_v31 }
  0x12   :  { %v89_v33 = vmax.f32 %v88_v32, 0.0 }
  0x14   :  { %90 = vst [vmem:[%s132_s3] sm:$0xff] %v89_v33 }

// kernel: _lambda_.81
= control target key start
LH: loop header
LB: loop body
LE: loop exit
PB: predicated region body
PF: predicated region fallthrough
CT: control target
= control target key end

     0   :  { %v20_v0 = vlaneseq  ;;  %v101_v1 = vmov 1983009808   ;;  %s142_s1 = inlined_call_operand.vmem [shape: f32[1,512], index: 1, kind: input, shape index: {}]   ;;  %s143_s2 = inlined_call_operand.vmem [shape: f32[1,512], index: 2, kind: input, shape index: {}]   ;;  %s144_s0 = inlined_call_operand.vmem [shape: f32[2,512], index: 0, kind: input, shape index: {}]   ;;  %s145_s3 = inlined_call_operand.vmem [shape: f32[2,512], index: 3, kind: input, shape index: {}]   ;;  %s146_s4 = inlined_call_operand.vmem [shape: f32[2,512], index: 4, kind: output, shape index: {}]  }
   0x1   :  { %v39_v2 = vunpack.c.l.s4 %v101_v1  ;;  %v18_v4 = vld [vmem:[%s142_s1] sm:$0xf] }
   0x2   :  { %v21_v3 = vshrl.u32 %v20_v0, 7  ;;  %v55_v10 = vld [vmem:[%s143_s2] sm:$0xf] }
   0x3   :  { %v40_v5 = vunpack.c.0.s8 %v39_v2  ;;  %v17_v26 = vld [vmem:[%s144_s0] sm:$0xff] }
   0x4   :  { %v22_v6 = vsub.s32 0, %v21_v3  ;;  %v26_v7 = vsub.s32 1, %v21_v3  ;;  %v30_v8 = vsub.s32 2, %v21_v3  ;;  %v34_v9 = vsub.s32 3, %v21_v3  ;;  %v92_v32 = vld [vmem:[%s145_s3] sm:$0xff] }
   0x5   :  { %v43_v11 = vsub.s32 %v40_v5, %v21_v3 }
   0x6   :  { %v23_v12 = vrot.slane %v18_v4, %v22_v6  ;;  %v27_v13 = vrot.slane %v18_v4, %v26_v7  ;;  %v31_v14 = vrot.slane %v18_v4, %v30_v8  ;;  %v35_v15 = vrot.slane %v18_v4, %v34_v9 }
   0x7   :  { %v60_v16 = vrot.slane %v55_v10, %v22_v6  ;;  %v64_v17 = vrot.slane %v55_v10, %v26_v7  ;;  %v68_v18 = vrot.slane %v55_v10, %v30_v8  ;;  %v72_v19 = vrot.slane %v55_v10, %v34_v9 }
   0x8   :  { %v36_v20 = vcombine.low %v23_v12, %v27_v13  ;;  %v37_v21 = vcombine.low %v31_v14, %v35_v15 }
   0x9   :  { %v73_v22 = vcombine.low %v60_v16, %v64_v17  ;;  %v74_v23 = vcombine.low %v68_v18, %v72_v19 }
   0xa   :  { %v44_v24 = vrot.slane %v36_v20, %v43_v11  ;;  %v51_v25 = vrot.slane %v37_v21, %v43_v11 }
   0xb   :  { %v81_v27 = vrot.slane %v73_v22, %v43_v11  ;;  %v88_v28 = vrot.slane %v74_v23, %v43_v11 }
   0xc   :  { %v52_v29 = vcombine.low %v44_v24, %v51_v25 }
   0xd   :  { %v89_v30 = vcombine.low %v81_v27, %v88_v28 }
   0xe   :  { %v54_v31 = vmul.f32 %v52_v29, %v17_v26 }
  0x10   :  { %v91_v33 = vadd.f32 %v89_v30, %v54_v31 }
  0x12   :  { %v93_v34 = vadd.f32 %v92_v32, %v91_v33 }
  0x14   :  { %v94_v35 = vmax.f32 %v93_v34, 0.0 }
  0x16   :  { %95 = vst [vmem:[%s146_s4] sm:$0xff] %v94_v35 }

// kernel: _lambda_.87
= control target key start
LH: loop header
LB: loop body
LE: loop exit
PB: predicated region body
PF: predicated region fallthrough
CT: control target
= control target key end

     0   :  { %s104_s0 = inlined_call_operand.vmem [shape: f32[32,128], index: 0, kind: input, shape index: {}]   ;;  %s105_s1 = inlined_call_operand.vmem [shape: f32[1,128], index: 1, kind: input, shape index: {}]   ;;  %s106_s2 = inlined_call_operand.vmem [shape: f32[1,128], index: 2, kind: input, shape index: {}]   ;;  %s107_s3 = inlined_call_operand.vmem [shape: f32[32,128], index: 3, kind: output, shape index: {}]  }
   0x1   :  { %v14_v0 = vld [vmem:[%s104_s0] sm:$0xff]  ;;  %v15_v4 = vld [vmem:[%s104_s0 + $0x8] sm:$0xff]  ;;  %v16_v5 = vld [vmem:[%s104_s0 + $0x10] sm:$0xff] }
   0x2   :  { %v52_v1 = vld [vmem:[%s105_s1] ss:$0 sm:$0xff]  ;;  %v17_v6 = vld [vmem:[%s104_s0 + $0x18] sm:$0xff] }
   0x3   :  { %v53_v2 = vld [vmem:[%s106_s2] ss:$0 sm:$0xff]  ;;  %v25_v3 = vmul.f32 %v52_v1, %v14_v0  ;;  %v26_v7 = vmul.f32 %v52_v1, %v15_v4  ;;  %v27_v8 = vmul.f32 %v52_v1, %v16_v5  ;;  %v28_v9 = vmul.f32 %v52_v1, %v17_v6 }
   0x5   :  { %v36_v10 = vadd.f32 %v53_v2, %v25_v3  ;;  %v37_v11 = vadd.f32 %v53_v2, %v26_v7  ;;  %v38_v12 = vadd.f32 %v53_v2, %v27_v8  ;;  %v39_v13 = vadd.f32 %v53_v2, %v28_v9 }
   0x7   :  { %v40_v14 = vmax.f32 %v36_v10, 0.0  ;;  %v41_v15 = vmax.f32 %v37_v11, 0.0  ;;  %v42_v16 = vmax.f32 %v38_v12, 0.0  ;;  %v43_v17 = vmax.f32 %v39_v13, 0.0 }
   0x9   :  { %44 = vst [vmem:[%s107_s3] sm:$0xff] %v40_v14  ;;  %45 = vst [vmem:[%s107_s3 + $0x8] sm:$0xff] %v41_v15 }
   0xa   :  { %46 = vst [vmem:[%s107_s3 + $0x10] sm:$0xff] %v42_v16  ;;  %47 = vst [vmem:[%s107_s3 + $0x18] sm:$0xff] %v43_v17 }

// kernel: _lambda_.86
= control target key start
LH: loop header
LB: loop body
LE: loop exit
PB: predicated region body
PF: predicated region fallthrough
CT: control target
= control target key end

     0   :  { %s748_s15 = smov 0   ;;  %s750_s16 = smov 0   ;;  %s798_s0 = inlined_call_operand.vmem [shape: bf16[2,16,3], index: 0, kind: input, shape index: {}]   ;;  %s799_s1 = inlined_call_operand.vmem [shape: bf16[3,128], index: 1, kind: input, shape index: {}]   ;;  %s800_s2 = inlined_call_operand.vmem [shape: f32[2,1,128], index: 2, kind: input, shape index: {}]   ;;  %s801_s3 = inlined_call_operand.vmem [shape: f32[2,16,128], index: 3, kind: output, shape index: {0}]   ;;  %s802_s4 = inlined_call_operand.vmem [shape: f32[2,1,2,128], index: 4, kind: output, shape index: {1}]  }
   0x1   :  { %s752_s17 = smov 0  }
   0x2 LB: > { %s41_s18 = sadd.s32 1, %s714_s16  ;;  %p647_p0 = scmp.ge.s32.totalorder %s718_s17, 1  ;;  %s718_s17 = sphi %s752_s17, %s15_s17   ;;  %s714_s16 = sphi %s750_s16, %s804_s16   ;;  %s710_s15 = sphi %s748_s15, %s803_s15  }
   0x3   : > { %p43_p1 = scmp.ge.s32.totalorder %s41_s18, 2  ;;  %p238_p2 = scmp.lt.s32.totalorder %s718_s17, 3 }
   0x5   : > { %s806_s18 = smov (%p43_p1, %s41_s18), 0  ;;  %p239_p3 = pnand %p647_p0, %p238_p2 }
   0x6   : > { %p302_p4 = scmp.lt.s32.totalorder (!%p239_p3), %s710_s15, 1 }
   0x7   : > { %242 = sbr.rel (%p239_p3) target bundleno = 237 (0xed), region = 32 }
   0xc   : > { %v368_v0 = vld [vmem:[%s799_s1] sm:$0x3]  ;;  %vm378_vm0 = vcmask 1040384   ;;  %vm379_vm1 = vcmask 1041408   ;;  %v720_v1 = vmov 0.0   ;;  %v721_v2 = vmov 65535  }
   0xd   : > { %662 = vmatprep.subr.bf16.mxu0 %v720_v1  ;;  %v380_v3 = vsel %vm378_vm0, 4294967295, %v721_v2  ;;  %vm722_vm2 = vmmov 0   ;;  %s808_s15 = smov (!%p302_p4, %s710_s15), 1  ;;  %vm374_vm3 = vcmask 23552  }
   0xe   : > { %v381_v4 = vsel %vm379_vm1, %v380_v3, 0  ;;  %664 = vmatprep.mubr.msk.bf16.mxu0 %vm722_vm2, %v720_v1  ;;  %s658_s21 = sshll.u32 %s808_s15, 3  ;;  %s326_s27 = scalar_lea.vmem %s800_s2, %s808_s15 }
   0xf   : > { %v383_v5 = vand.u32 %v381_v4, %v368_v0  ;;  %s312_s24 = scalar_lea.vmem %s798_s0, %s658_s21  ;;  %s659_s28 = sshll.u32 %s808_s15, 4  ;;  %v653_v7 = vld [vmem:[%s326_s27] ss:$0 sm:$0xff] }
  0x10   : > { %v695_v6 = vld [vmem:[%s312_s24] sm:$0xff]   ;;  %s338_s5 = scalar_lea.vmem %s801_s3, %s659_s28  ;;  %s652_s6 = sshll.u32 %s808_s15, 1 }
  0x11   : > { %663 = vmatpush3.bf16.msra.mxu0 %v383_v5  ;;  %s349_s9 = scalar_lea.vmem %s802_s4, %s652_s6 }
  0x14   : > { %665 = vmatmul.mubr.msk.bf16.vlgmr.msra.gmra.mxu0 %vm374_vm3, %v695_v6 }
  0xd4   : > { %v419_v8 = vpop.f32.mrf.mxu0 }
  0xd5   : > { %v426_v9 = vadd.f32 %v653_v7, %v419_v8 }
  0xd6   : > { %v666_v10 = vpop.f32.mrf.mxu0 }
  0xd7   : > { %435 = vst [vmem:[%s338_s5] sm:$0xff] %v426_v9  ;;  %v444_v14 = vmul.f32 %v426_v9, %v426_v9 }
  0xd8   : > { %v422_v11 = vpop.f32.mrf.mxu0 }
  0xd9   : > { %v427_v12 = vadd.f32 %v653_v7, %v422_v11 }
  0xda   : > { %v667_v13 = vpop.f32.mrf.mxu0 }
  0xdb   : > { %436 = vst [vmem:[%s338_s5 + $0x8] sm:$0xff] %v427_v12  ;;  %v437_v15 = vadd.f32 %v427_v12, %v426_v9  ;;  %v445_v16 = vmul.f32 %v427_v12, %v427_v12 }
  0xdd   : > { %v438_v17 = vrot.slane %v437_v15, 4  ;;  %v446_v18 = vadd.f32 %v445_v16, %v444_v14 }
  0xdf   : > { %v439_v19 = vadd.f32 %v438_v17, %v437_v15  ;;  %v447_v20 = vrot.slane %v446_v18, 4 }
  0xe1   : > { %v440_v21 = vrot.slane %v439_v19, 2  ;;  %v448_v22 = vadd.f32 %v447_v20, %v446_v18 }
  0xe3   : > { %v441_v23 = vadd.f32 %v440_v21, %v439_v19  ;;  %v449_v24 = vrot.slane %v448_v22, 2 }
  0xe5   : > { %v442_v25 = vrot.slane %v441_v23, 1  ;;  %v450_v26 = vadd.f32 %v449_v24, %v448_v22 }
  0xe7   : > { %v451_v27 = vrot.slane %v450_v26, 1  ;;  %v443_v28 = vadd.f32 %v442_v25, %v441_v23 }
  0xe9   : > { %v452_v29 = vadd.f32 %v451_v27, %v450_v26 }
  0xeb   : > { %v453_v30 = vsel %vm378_vm0, %v443_v28, %v452_v29 }
  0xec   : > { %454 = vst [vmem:[%s349_s9] sm:$0x3] %v453_v30 }
  0xed PF: > { %s15_s17 = sadd.s32 1, %s718_s17   ;;  %s803_s15 = smov %s714_s16 }
  0xee   : > { %p12_p5 = scmp.ge.s32.totalorder %s15_s17, 4   ;;  %s804_s16 = smov %s806_s18 }
  0xf0   :  { %14 = sbr.rel (!%p12_p5) target bundleno = 2 (0x2), region = 88 }

// kernel: _lambda_.88
= control target key start
LH: loop header
LB: loop body
LE: loop exit
PB: predicated region body
PF: predicated region fallthrough
CT: control target
= control target key end

     0   :  { %s1070_s21 = smov 0   ;;  %s1072_s22 = smov 0   ;;  %s1151_s0 = inlined_call_operand.vmem [shape: bf16[2,16,128], index: 0, kind: input, shape index: {}]   ;;  %s1152_s1 = inlined_call_operand.vmem [shape: bf16[128,128], index: 1, kind: input, shape index: {}]   ;;  %s1153_s2 = inlined_call_operand.vmem [shape: bf16[2,16,3], index: 2, kind: input, shape index: {}]   ;;  %s1154_s3 = inlined_call_operand.vmem [shape: bf16[3,128], index: 3, kind: input, shape index: {}]   ;;  %s1155_s4 = inlined_call_operand.vmem [shape: f32[2,1,128], index: 4, kind: input, shape index: {}]   ;;  %s1156_s5 = inlined_call_operand.vmem [shape: f32[2,16,128], index: 5, kind: output, shape index: {0}]   ;;  %s1157_s6 = inlined_call_operand.vmem [shape: f32[2,1,2,128], index: 6, kind: output, shape index: {1}]  }
   0x1   :  { %s1074_s23 = smov 0  }
   0x2 LB: > { %s43_s24 = sadd.s32 1, %s1026_s22  ;;  %p909_p0 = scmp.ge.s32.totalorder %s1030_s23, 1  ;;  %s1030_s23 = sphi %s1074_s23, %s17_s23   ;;  %s1026_s22 = sphi %s1072_s22, %s1159_s22   ;;  %s1022_s21 = sphi %s1070_s21, %s1158_s21  }
   0x3   : > { %p45_p1 = scmp.ge.s32.totalorder %s43_s24, 2  ;;  %p316_p2 = scmp.lt.s32.totalorder %s1030_s23, 3 }
   0x5   : > { %s1161_s24 = smov (%p45_p1, %s43_s24), 0  ;;  %p317_p3 = pnand %p909_p0, %p316_p2 }
   0x6   : > { %p398_p4 = scmp.lt.s32.totalorder (!%p317_p3), %s1022_s21, 1 }
   0x7   : > { %320 = sbr.rel (%p317_p3) target bundleno = 262 (0x106), region = 40 }
   0xc   : > { %v998_v0 = vld [vmem:[%s1152_s1 + $0x38] sm:$0xff]   ;;  %v1032_v1 = vmov 0.0   ;;  %vm486_vm0 = vcmask 1040384   ;;  %v999_v2 = vld [vmem:[%s1152_s1 + $0x30] sm:$0xff]   ;;  %vm487_vm1 = vcmask 1041408   ;;  %v1033_v3 = vmov 65535  }
   0xd   : > { %951 = vmatprep.subr.bf16.mxu1 %v1032_v1  ;;  %945 = vmatprep.subr.bf16.mxu0 %v1032_v1  ;;  %v488_v4 = vsel %vm486_vm0, 4294967295, %v1033_v3  ;;  %v476_v5 = vld [vmem:[%s1154_s3] sm:$0x3]  ;;  %v1000_v7 = vld [vmem:[%s1152_s1 + $0x28] sm:$0xff]   ;;  %vm1034_vm2 = vmmov 0   ;;  %s1163_s21 = smov (!%p398_p4, %s1022_s21), 1 }
   0xe   : > { %952 = vmatpush3.bf16.msra.mxu1 %v998_v0  ;;  %v489_v6 = vsel %vm487_vm1, %v488_v4, 0  ;;  %947 = vmatprep.mubr.msk.bf16.mxu0 %vm1034_vm2, %v1032_v1  ;;  %v1001_v9 = vld [vmem:[%s1152_s1 + $0x20] sm:$0xff]   ;;  %s931_s11 = sshll.u32 %s1163_s21, 3  ;;  %vm482_vm3 = vcmask 23552   ;;  %v1002_v11 = vld [vmem:[%s1152_s1 + $0x18] sm:$0xff]   ;;  %v1003_v12 = vld [vmem:[%s1152_s1 + $0x10] sm:$0xff]   ;;  %s438_s8 = scalar_lea.vmem %s1155_s4, %s1163_s21 }
   0xf   : > { %953 = vmatprep.subr.bf16.mxu1 %v1032_v1  ;;  %v491_v8 = vand.u32 %v489_v6, %v476_v5  ;;  %967 = vmatprep.mubr.msk.bf16.mxu1 %vm1034_vm2, %v1032_v1  ;;  %s427_s14 = scalar_lea.vmem %s1153_s2, %s931_s11  ;;  %s408_s17 = scalar_lea.vmem %s1151_s0, %s931_s11  ;;  %v1005_v13 = vld [vmem:[%s1152_s1 + $0x8] sm:$0xff]   ;;  %v1006_v14 = vld [vmem:[%s1152_s1] sm:$0xff]  }
  0x10   : > { %v1004_v10 = vld [vmem:[%s427_s14] sm:$0xff]   ;;  %s933_s9 = sshll.u32 %s1163_s21, 4  ;;  %s916_s13 = sshll.u32 %s1163_s21, 1 }
  0x11   : > { %946 = vmatpush3.bf16.msra.mxu0 %v491_v8  ;;  %v1007_v15 = vld [vmem:[%s408_s17] sm:$0xff]   ;;  %s450_s12 = scalar_lea.vmem %s1156_s5, %s933_s9  ;;  %s461_s16 = scalar_lea.vmem %s1157_s6, %s916_s13 }
  0x12   : > { %954 = vmatpush3.bf16.msra.mxu1 %v999_v2  ;;  %v917_v20 = vld [vmem:[%s438_s8] ss:$0 sm:$0xff] }
  0x13   : > { %955 = vmatprep.subr.bf16.mxu1 %v1032_v1 }
  0x14   : > { %948 = vmatmul.mubr.msk.bf16.vlgmr.msra.gmra.mxu0 %vm482_vm3, %v1004_v10 }
  0x16   : > { %956 = vmatpush3.bf16.msra.mxu1 %v1000_v7 }
  0x17   : > { %957 = vmatprep.subr.bf16.mxu1 %v1032_v1 }
  0x1a   : > { %958 = vmatpush3.bf16.msra.mxu1 %v1001_v9 }
  0x1b   : > { %959 = vmatprep.subr.bf16.mxu1 %v1032_v1 }
  0x1e   : > { %960 = vmatpush3.bf16.msra.mxu1 %v1002_v11 }
  0x1f   : > { %961 = vmatprep.subr.bf16.mxu1 %v1032_v1 }
  0x22   : > { %962 = vmatpush3.bf16.msra.mxu1 %v1003_v12 }
  0x23   : > { %963 = vmatprep.subr.bf16.mxu1 %v1032_v1 }
  0x26   : > { %964 = vmatpush3.bf16.msra.mxu1 %v1005_v13 }
  0x27   : > { %965 = vmatprep.subr.bf16.mxu1 %v1032_v1 }
  0x2a   : > { %966 = vmatpush3.bf16.msra.mxu1 %v1006_v14 }
  0x2d   : > { %968 = vmatmul.mubr.bf16.vlgmr.msra.gmra.mxu1 %v1007_v15 }
  0xd4   : > { %v527_v16 = vpop.f32.mrf.mxu0 }
  0xd5   : > { %v534_v21 = vadd.f32 %v917_v20, %v527_v16 }
  0xd6   : > { %v949_v17 = vpop.f32.mrf.mxu0 }
  0xd8   : > { %v530_v18 = vpop.f32.mrf.mxu0 }
  0xd9   : > { %v535_v25 = vadd.f32 %v917_v20, %v530_v18 }
  0xda   : > { %v950_v19 = vpop.f32.mrf.mxu0 }
  0xed   : > { %v646_v22 = vpop.f32.mrf.mxu1 }
  0xee   : > { %v653_v23 = vadd.f32 %v646_v22, %v534_v21 }
  0xef   : > { %v969_v24 = vpop.f32.mrf.mxu1 }
  0xf0   : > { %662 = vst [vmem:[%s450_s12] sm:$0xff] %v653_v23  ;;  %v671_v29 = vmul.f32 %v653_v23, %v653_v23 }
  0xf1   : > { %v649_v26 = vpop.f32.mrf.mxu1 }
  0xf2   : > { %v654_v27 = vadd.f32 %v649_v26, %v535_v25 }
  0xf3   : > { %v970_v28 = vpop.f32.mrf.mxu1 }
  0xf4   : > { %663 = vst [vmem:[%s450_s12 + $0x8] sm:$0xff] %v654_v27  ;;  %v664_v30 = vadd.f32 %v654_v27, %v653_v23  ;;  %v672_v31 = vmul.f32 %v654_v27, %v654_v27 }
  0xf6   : > { %v665_v32 = vrot.slane %v664_v30, 4  ;;  %v673_v33 = vadd.f32 %v672_v31, %v671_v29 }
  0xf8   : > { %v666_v34 = vadd.f32 %v665_v32, %v664_v30  ;;  %v674_v35 = vrot.slane %v673_v33, 4 }
  0xfa   : > { %v667_v36 = vrot.slane %v666_v34, 2  ;;  %v675_v37 = vadd.f32 %v674_v35, %v673_v33 }
  0xfc   : > { %v668_v38 = vadd.f32 %v667_v36, %v666_v34  ;;  %v676_v39 = vrot.slane %v675_v37, 2 }
  0xfe   : > { %v669_v40 = vrot.slane %v668_v38, 1  ;;  %v677_v41 = vadd.f32 %v676_v39, %v675_v37 }
 0x100   : > { %v678_v42 = vrot.slane %v677_v41, 1  ;;  %v670_v43 = vadd.f32 %v669_v40, %v668_v38 }
 0x102   : > { %v679_v44 = vadd.f32 %v678_v42, %v677_v41 }
 0x104   : > { %v681_v45 = vsel %vm486_vm0, %v670_v43, %v679_v44 }
 0x105   : > { %682 = vst [vmem:[%s461_s16] sm:$0x3] %v681_v45 }
 0x106 PF: > { %s17_s23 = sadd.s32 1, %s1030_s23   ;;  %s1158_s21 = smov %s1026_s22 }
 0x107   : > { %p14_p5 = scmp.ge.s32.totalorder %s17_s23, 4   ;;  %s1159_s22 = smov %s1161_s24 }
 0x109   :  { %16 = sbr.rel (!%p14_p5) target bundleno = 2 (0x2), region = 102 }

</bundles_post_ra>
